<compile_context>
chip_gen: v7x
topology: tpu7x:2x2x1
jax: 0.10.0
libtpu: 0.0.40
codegen_flags: <defaults>
</compile_context>

<pallas_src>
import functools

import jax
import jax.numpy as jnp
import numpy as np
from jax.experimental import pallas as pl
from jax.experimental.pallas import tpu as pltpu


# ------------------------------- fused kernel -------------------------------


def decoder_kernel(x_ref, row_ref, colid_ref, w0_ref, b0_ref, w3_ref, b3_ref,
                   wpr_ref, bproj_ref, wfin_ref, bfin_ref, o_ref,
                   im_ref, cat_ref, *, H, W, Cin, Cout, rates):
    """Whole DeepLabV3 decoder for one image; channels on sublanes, H*W on lanes.

    x_ref     : (1, Cin, HW)          bf16  unpadded input, lane-dense
    row_ref   : (1, HW)               i32   row index of every flattened pixel
    colid_ref : (1, HW)               i32   col index of every flattened pixel
    w0_ref    : (Cout, Cin)           bf16  1x1 branch (BN scale folded)
    w3_ref    : (R, Cout, 9*Cin)      bf16  dilated 3x3 branches (BN folded)
    wpr_ref   : (Cout, (R+1)*Cout)    bf16  projection over the 4 spatial branches
    wfin_ref  : (Cout, 9*Cout)        bf16  final 3x3 (BN folded)
    b*_ref    : (..., Cout, 1)        f32   folded biases; bproj is per-image and
                                            already contains the pooling-branch term
    o_ref     : (1, Cout, HW)         f32
    im_ref    : (9*max(Cin,Cout), HW) f32   im2col scratch (reused by the final conv)
    cat_ref   : ((R+1)*Cout, HW)      f32   virtual-concat scratch for the projection
    """
    HW = H * W
    f32 = jnp.float32
    bf16 = jnp.bfloat16
    R = len(rates)

    x_bf = x_ref[0]                      # (Cin, HW) bf16
    x32 = x_bf.astype(f32)               # rolls use the 32-bit XLU rotate path
    row = row_ref[...]                   # (1, HW) i32
    col = colid_ref[...]                 # (1, HW) i32

    def tap(src32, dy, dx):
        """src shifted by (dy, dx) with zero padding, still (C, HW) lane-dense."""
        s = dy * W + dx
        t = src32 if s == 0 else pltpu.roll(src32, shift=(-s) % HW, axis=1)
        conds = []
        if dy > 0:
            conds.append(row < H - dy)
        if dy < 0:
            conds.append(row >= -dy)
        if dx > 0:
            conds.append(col < W - dx)
        if dx < 0:
            conds.append(col >= -dx)
        if conds:
            ok = conds[0]
            for c in conds[1:]:
                ok = jnp.logical_and(ok, c)
            t = t * ok.astype(f32)       # (1,HW) mask broadcast over channels (VPU)
        return t

    # ---- ASPP branch 0: 1x1 conv (+folded BN) + ReLU -> concat scratch ----
    y0 = jnp.maximum(
        jnp.dot(w0_ref[...], x_bf, preferred_element_type=f32) + b0_ref[...], 0.0)
    cat_ref[0:Cout, :] = y0

    # ---- ASPP dilated 3x3 branches: roll-based im2col -> one MXU matmul each ----
    for bi, d in enumerate(rates):
        for kh in range(3):
            for kw in range(3):
                ti = kh * 3 + kw
                im_ref[ti * Cin:(ti + 1) * Cin, :] = tap(
                    x32, (kh - 1) * d, (kw - 1) * d)
        y = jnp.maximum(
            jnp.dot(w3_ref[bi], im_ref[0:9 * Cin, :].astype(bf16),
                    preferred_element_type=f32) + b3_ref[bi], 0.0)
        cat_ref[(1 + bi) * Cout:(2 + bi) * Cout, :] = y

    # ---- 1x1 projection over the virtual concat: a single K=(R+1)*Cout matmul.
    # The (spatially constant) pooling branch arrives pre-folded into bproj. ----
    proj = jnp.maximum(
        jnp.dot(wpr_ref[...], cat_ref[...].astype(bf16),
                preferred_element_type=f32) + bproj_ref[0], 0.0)
    # nn.Dropout is identity in eval mode.

    # ---- final 3x3 conv (pad=1) + folded BN + ReLU, again via rolls (no pad scratch) ----
    for kh in range(3):
        for kw in range(3):
            ti = kh * 3 + kw
            im_ref[ti * Cout:(ti + 1) * Cout, :] = tap(proj, kh - 1, kw - 1)
    out = jnp.maximum(
        jnp.dot(wfin_ref[...], im_ref[0:9 * Cout, :].astype(bf16),
                preferred_element_type=f32) + bfin_ref[...], 0.0)
    o_ref[0] = out.astype(o_ref.dtype)


# ------------------------------ Pallas wrapper -------------------------------


def deeplabv3_decoder_forward(features_nchw, prep, *, atrous_rates, Cin, Cout):
    """features: list of NCHW arrays; returns NCHW output (matches PyTorch)."""
    x = features_nchw[-1].astype(jnp.float32)
    N, _, H, W = x.shape
    HW = H * W
    R = len(atrous_rates)

    # --- pooling branch in XLA (spatially constant -> per-image projection bias).
    mean = jnp.mean(x, axis=(2, 3))                                        # (N, Cin)
    yp = jnp.maximum(
        jnp.dot(mean.astype(jnp.bfloat16), prep["wp"].T,
                preferred_element_type=jnp.float32)
        + prep["bp"].reshape(1, Cout), 0.0)                                 # (N, Cout)
    pool_c = jnp.dot(yp.astype(jnp.bfloat16), prep["wpr_pool"].T,
                     preferred_element_type=jnp.float32)                    # (N, Cout)
    bproj = (pool_c + prep["bpr"].reshape(1, Cout)).reshape(N, Cout, 1)

    # --- lane-dense, bf16, UNPADDED input feed (free reshape; no jnp.pad).
    # NOTE: HW is a multiple of 128 here (unmasked lane-dense stores); pad HW otherwise.
    x_flat = x.astype(jnp.bfloat16).reshape(N, Cin, HW)

    # --- per-pixel row/col indices for the virtual zero-padding masks.
    rows = jnp.asarray(np.repeat(np.arange(H, dtype=np.int32), W).reshape(1, HW))
    cols = jnp.asarray(np.tile(np.arange(W, dtype=np.int32), H).reshape(1, HW))

    kern = functools.partial(decoder_kernel, H=H, W=W, Cin=Cin, Cout=Cout,
                             rates=tuple(atrous_rates))

    flops = 2 * N * HW * Cout * (Cin + R * 9 * Cin + (R + 1) * Cout + 9 * Cout)
    bytes_accessed = int(N * Cin * HW * 2 + N * Cout * HW * 4
                         + sum(int(np.prod(prep[k].shape)) * 2
                               for k in ("w0", "w3", "wpr_sp", "wfin")))

    out_flat = pl.pallas_call(
        kern,
        out_shape=jax.ShapeDtypeStruct((N, Cout, HW), jnp.float32),
        grid=(N,),
        in_specs=[
            pl.BlockSpec((1, Cin, HW), lambda n: (n, 0, 0)),         # x (bf16)
            pl.BlockSpec((1, HW), lambda n: (0, 0)),                 # row ids
            pl.BlockSpec((1, HW), lambda n: (0, 0)),                 # col ids
            pl.BlockSpec((Cout, Cin), lambda n: (0, 0)),             # w0
            pl.BlockSpec((Cout, 1), lambda n: (0, 0)),               # b0
            pl.BlockSpec((R, Cout, 9 * Cin), lambda n: (0, 0, 0)),   # w3
            pl.BlockSpec((R, Cout, 1), lambda n: (0, 0, 0)),         # b3
            pl.BlockSpec((Cout, (R + 1) * Cout), lambda n: (0, 0)),  # wpr (spatial)
            pl.BlockSpec((1, Cout, 1), lambda n: (n, 0, 0)),         # bproj per image
            pl.BlockSpec((Cout, 9 * Cout), lambda n: (0, 0)),        # wfin
            pl.BlockSpec((Cout, 1), lambda n: (0, 0)),               # bfin
        ],
        out_specs=pl.BlockSpec((1, Cout, HW), lambda n: (n, 0, 0)),
        scratch_shapes=[
            pltpu.VMEM((9 * max(Cin, Cout), HW), jnp.float32),       # im2col scratch
            pltpu.VMEM(((R + 1) * Cout, HW), jnp.float32),           # concat scratch
        ],
        compiler_params=pltpu.CompilerParams(dimension_semantics=("parallel",)),
        cost_estimate=pl.CostEstimate(flops=flops, transcendentals=0,
                                      bytes_accessed=bytes_accessed),
    )(x_flat, rows, cols, prep["w0"], prep["b0"], prep["w3"], prep["b3"],
      prep["wpr_sp"], bproj, prep["wfin"], prep["bfin"])

    # (N, Cout, H*W) is already NCHW-flattened: reshape only, no transpose.
    return out_flat.reshape(N, Cout, H, W)


# -------------------- parameter init + host-side weight prep -----------------


def fold_bn(gamma, beta, mean, var, eps=1e-5):
    scale = gamma / jnp.sqrt(var + eps)
    bias = beta - mean * scale
    return scale, bias


def init_params(key, in_channels, out_channels, atrous_rates):
    params = {}

    def conv_w(k, shape, fan_in):
        return (jax.random.normal(k, shape, jnp.float32) /
                np.sqrt(fan_in)).astype(jnp.float32)

    def bn(k, c):
        k1, k2, k3, k4 = jax.random.split(k, 4)
        gamma = 0.5 + jax.random.uniform(k1, (c,), jnp.float32)
        beta = 0.1 * jax.random.normal(k2, (c,), jnp.float32)
        mean = 0.1 * jax.random.normal(k3, (c,), jnp.float32)
        var = 0.5 + jax.random.uniform(k4, (c,), jnp.float32)
        return fold_bn(gamma, beta, mean, var)

    keys = jax.random.split(key, 16)
    ki = iter(keys)

    params["b0_w"] = conv_w(next(ki), (1, 1, in_channels, out_channels), in_channels)
    params["b0_s"], params["b0_b"] = bn(next(ki), out_channels)
    for i, _ in enumerate(atrous_rates):
        params[f"b{i+1}_w"] = conv_w(next(ki), (3, 3, in_channels, out_channels),
                                     9 * in_channels)
        params[f"b{i+1}_s"], params[f"b{i+1}_b"] = bn(next(ki), out_channels)
    params["bp_w"] = conv_w(next(ki), (in_channels, out_channels), in_channels)
    params["bp_s"], params["bp_b"] = bn(next(ki), out_channels)
    params["pr_w"] = conv_w(next(ki), (1, 1, 5 * out_channels, out_channels),
                            5 * out_channels)
    params["pr_s"], params["pr_b"] = bn(next(ki), out_channels)
    params["fin_w"] = conv_w(next(ki), (3, 3, out_channels, out_channels),
                             9 * out_channels)
    params["fin_s"], params["fin_b"] = bn(next(ki), out_channels)
    return params


def prepare_kernel_params(params, atrous_rates, Cin, Cout):
    """Fold BN scales into conv weights, transpose into (Cout, ...) im2col matrices,
    cast MXU operands to bf16, keep biases as (Cout, 1) f32."""
    def fold(w_mat, s):
        return (w_mat * s[:, None]).astype(jnp.bfloat16)

    R = len(atrous_rates)
    prep = {}
    prep["w0"] = fold(params["b0_w"][0, 0].T, params["b0_s"])               # (Cout,Cin)
    prep["b0"] = params["b0_b"].reshape(Cout, 1).astype(jnp.float32)

    w3, b3 = [], []
    for i in range(R):
        wm = params[f"b{i+1}_w"].transpose(3, 0, 1, 2).reshape(Cout, 9 * Cin)
        w3.append(fold(wm, params[f"b{i+1}_s"]))
        b3.append(params[f"b{i+1}_b"].reshape(Cout, 1))
    prep["w3"] = jnp.stack(w3)                                              # (R,Cout,9Cin)
    prep["b3"] = jnp.stack(b3).astype(jnp.float32)                          # (R,Cout,1)

    prep["wp"] = fold(params["bp_w"].T, params["bp_s"])                     # (Cout,Cin)
    prep["bp"] = params["bp_b"].reshape(Cout, 1).astype(jnp.float32)

    wpr_full = fold(params["pr_w"][0, 0].T, params["pr_s"])                 # (Cout,5Cout)
    prep["wpr_sp"] = wpr_full[:, :(R + 1) * Cout]                           # spatial blocks
    prep["wpr_pool"] = wpr_full[:, (R + 1) * Cout:]                         # pooling block
    prep["bpr"] = params["pr_b"].reshape(Cout, 1).astype(jnp.float32)

    prep["wfin"] = fold(params["fin_w"].transpose(3, 0, 1, 2).reshape(Cout, 9 * Cout),
                        params["fin_s"])                                    # (Cout,9Cout)
    prep["bfin"] = params["fin_b"].reshape(Cout, 1).astype(jnp.float32)
    return prep


# ------------------------------ pure-JAX references --------------------------


def _cbr_bf16(x_bf16, w_hwio_bf16, bias_row, dil, pad):
    y = jax.lax.conv_general_dilated(
        x_bf16, w_hwio_bf16, (1, 1), ((pad, pad), (pad, pad)),
        rhs_dilation=(dil, dil), dimension_numbers=("NHWC", "HWIO", "NHWC"),
        preferred_element_type=jnp.float32)
    return jnp.maximum(y + bias_row.reshape(1, 1, 1, -1), 0.0)


def reference_forward_matched(x_nchw, prep, atrous_rates, Cin, Cout):
    """Same bf16-operand / f32-accumulate precision as the kernel (tight check)."""
    x = jnp.transpose(x_nchw, (0, 2, 3, 1)).astype(jnp.float32)   # NHWC
    xb = x.astype(jnp.bfloat16)
    R = len(atrous_rates)

    res = [_cbr_bf16(xb, prep["w0"].T[None, None], prep["b0"], 1, 0)]
    for i in range(R):
        w_hwio = prep["w3"][i].reshape(Cout, 3, 3, Cin).transpose(1, 2, 3, 0)
        res.append(_cbr_bf16(xb, w_hwio, prep["b3"][i],
                             atrous_rates[i], atrous_rates[i]))
    mean = jnp.mean(x, axis=(1, 2))                                # (N, Cin) f32
    yp = jnp.maximum(jnp.dot(mean.astype(jnp.bfloat16), prep["wp"].T,
                             preferred_element_type=jnp.float32)
                     + prep["bp"].reshape(1, Cout), 0.0)
    res.append(jnp.broadcast_to(yp[:, None, None, :], x.shape[:3] + (Cout,)))

    cat = jnp.concatenate(res, axis=-1).astype(jnp.bfloat16)
    wpr_full = jnp.concatenate([prep["wpr_sp"], prep["wpr_pool"]], axis=1)
    proj = _cbr_bf16(cat, wpr_full.T[None, None], prep["bpr"], 1, 0)

    w_fin_hwio = prep["wfin"].reshape(Cout, 3, 3, Cout).transpose(1, 2, 3, 0)
    out = _cbr_bf16(proj.astype(jnp.bfloat16), w_fin_hwio, prep["bfin"], 1, 1)
    return jnp.transpose(out, (0, 3, 1, 2))


def _cbr_f32(x, w, s, b, dil, pad):
    y = jax.lax.conv_general_dilated(
        x, w, (1, 1), ((pad, pad), (pad, pad)), rhs_dilation=(dil, dil),
        dimension_numbers=("NHWC", "HWIO", "NHWC"),
        precision=jax.lax.Precision.HIGHEST)
    return jnp.maximum(y * s + b, 0.0)


def reference_forward_f32(x_nchw, params, atrous_rates):
    """Full-f32 reference of the original module (loose sanity check)."""
    x = jnp.transpose(x_nchw, (0, 2, 3, 1)).astype(jnp.float32)
    res = [_cbr_f32(x, params["b0_w"], params["b0_s"], params["b0_b"], 1, 0)]
    for i, rate in enumerate(atrous_rates):
        res.append(_cbr_f32(x, params[f"b{i+1}_w"], params[f"b{i+1}_s"],
                            params[f"b{i+1}_b"], rate, rate))
    mean = jnp.mean(x, axis=(1, 2))
    p = jnp.maximum(jnp.dot(mean, params["bp_w"],
                            precision=jax.lax.Precision.HIGHEST)
                    * params["bp_s"] + params["bp_b"], 0.0)
    res.append(jnp.broadcast_to(p[:, None, None, :], x.shape[:3] + (p.shape[-1],)))
    cat = jnp.concatenate(res, axis=-1)
    proj = _cbr_f32(cat, params["pr_w"], params["pr_s"], params["pr_b"], 1, 0)
    out = _cbr_f32(proj, params["fin_w"], params["fin_s"], params["fin_b"], 1, 1)
    return jnp.transpose(out, (0, 3, 1, 2))


# ----------------------------------- main ------------------------------------

if __name__ == "__main__":
    N, Cin, H, W = 2, 16, 16, 16
    Cout = 8
    atrous_rates = (1, 2, 3)

    key = jax.random.PRNGKey(0)
    k_x, k_p = jax.random.split(key)
    x_nchw = jax.random.normal(k_x, (N, Cin, H, W), jnp.float32)
    params = init_params(k_p, Cin, Cout, atrous_rates)
    prep = prepare_kernel_params(params, atrous_rates, Cin, Cout)

    out = deeplabv3_decoder_forward([x_nchw], prep, atrous_rates=atrous_rates,
                                    Cin=Cin, Cout=Cout)
    out = jax.block_until_ready(out)
    assert out.shape == (N, Cout, H, W), out.shape
    out_np = np.asarray(out)

    # Tight check vs. a reference using identical bf16-MXU / f32-accumulate precision.
    ref_m = jax.block_until_ready(
        reference_forward_matched(x_nchw, prep, atrous_rates, Cin, Cout))
    np.testing.assert_allclose(out_np, np.asarray(ref_m), rtol=2e-3, atol=2e-3)

    # Loose sanity check vs. the exact-f32 semantics of the original module
    # (the only difference is the bf16 MXU-operand quantization).
    ref_f = jax.block_until_ready(
        reference_forward_f32(x_nchw, params, atrous_rates))
    np.testing.assert_allclose(out_np, np.asarray(ref_f), rtol=1e-1, atol=1e-1)

    print("KERNEL_OK")
</pallas_src>

<mosaic_0001>
module attributes {stable_mosaic.version = 11 : i64} {
  func.func @decoder_kernel(%arg0: i32, %arg1: memref<1x16x256xbf16, #tpu.memory_space<vmem>>, %arg2: memref<1x256xi32, #tpu.memory_space<vmem>>, %arg3: memref<1x256xi32, #tpu.memory_space<vmem>>, %arg4: memref<8x16xbf16, #tpu.memory_space<vmem>>, %arg5: memref<8x1xf32, #tpu.memory_space<vmem>>, %arg6: memref<3x8x144xbf16, #tpu.memory_space<vmem>>, %arg7: memref<3x8x1xf32, #tpu.memory_space<vmem>>, %arg8: memref<8x32xbf16, #tpu.memory_space<vmem>>, %arg9: memref<1x8x1xf32, #tpu.memory_space<vmem>>, %arg10: memref<8x72xbf16, #tpu.memory_space<vmem>>, %arg11: memref<8x1xf32, #tpu.memory_space<vmem>>, %arg12: memref<1x8x256xf32, #tpu.memory_space<vmem>>, %arg13: memref<144x256xf32, #tpu.memory_space<vmem>>, %arg14: memref<32x256xf32, #tpu.memory_space<vmem>>) attributes {dimension_semantics = [#tpu.dimension_semantics<parallel>], iteration_bounds = array<i64: 2>, scalar_prefetch = 0 : i64, scratch_operands = 2 : i64, tpu.core_type = #tpu.core_type<tc>, window_params = [{transform_indices = @transform_0, window_bounds = array<i64: 1, 16, 256>}, {pipeline_mode = #tpu.pipeline_mode<synchronous>, transform_indices = @transform_1, window_bounds = array<i64: 1, 256>}, {pipeline_mode = #tpu.pipeline_mode<synchronous>, transform_indices = @transform_2, window_bounds = array<i64: 1, 256>}, {pipeline_mode = #tpu.pipeline_mode<synchronous>, transform_indices = @transform_3, window_bounds = array<i64: 8, 16>}, {pipeline_mode = #tpu.pipeline_mode<synchronous>, transform_indices = @transform_4, window_bounds = array<i64: 8, 1>}, {pipeline_mode = #tpu.pipeline_mode<synchronous>, transform_indices = @transform_5, window_bounds = array<i64: 3, 8, 144>}, {pipeline_mode = #tpu.pipeline_mode<synchronous>, transform_indices = @transform_6, window_bounds = array<i64: 3, 8, 1>}, {pipeline_mode = #tpu.pipeline_mode<synchronous>, transform_indices = @transform_7, window_bounds = array<i64: 8, 32>}, {transform_indices = @transform_8, window_bounds = array<i64: 1, 8, 1>}, {pipeline_mode = #tpu.pipeline_mode<synchronous>, transform_indices = @transform_9, window_bounds = array<i64: 8, 72>}, {pipeline_mode = #tpu.pipeline_mode<synchronous>, transform_indices = @transform_10, window_bounds = array<i64: 8, 1>}, {transform_indices = @transform_11, window_bounds = array<i64: 1, 8, 256>}]} {
    %c0 = arith.constant 0 : index
    %c0_0 = arith.constant 0 : index
    %c0_1 = arith.constant 0 : index
    %0 = vector.load %arg1[%c0, %c0_0, %c0_1] : memref<1x16x256xbf16, #tpu.memory_space<vmem>>, vector<1x16x256xbf16>
    %1 = vector.shape_cast %0 : vector<1x16x256xbf16> to vector<16x256xbf16>
    %2 = arith.extf %1 : vector<16x256xbf16> to vector<16x256xf32>
    %c0_2 = arith.constant 0 : index
    %c0_3 = arith.constant 0 : index
    %3 = vector.load %arg2[%c0_2, %c0_3] : memref<1x256xi32, #tpu.memory_space<vmem>>, vector<1x256xi32>
    %c0_4 = arith.constant 0 : index
    %c0_5 = arith.constant 0 : index
    %4 = vector.load %arg3[%c0_4, %c0_5] : memref<1x256xi32, #tpu.memory_space<vmem>>, vector<1x256xi32>
    %c0_6 = arith.constant 0 : index
    %c0_7 = arith.constant 0 : index
    %5 = vector.load %arg4[%c0_6, %c0_7] : memref<8x16xbf16, #tpu.memory_space<vmem>>, vector<8x16xbf16>
    %cst = arith.constant dense<0.000000e+00> : vector<8x256xf32>
    %6 = tpu.matmul %5, %1, %cst {dimension_numbers = #tpu.dot_dimension_numbers<[1], [0], [0], [1], [0, 0, 1, 1], [], []>} : vector<8x16xbf16>, vector<16x256xbf16>, vector<8x256xf32> -> vector<8x256xf32>
    %c0_8 = arith.constant 0 : index
    %c0_9 = arith.constant 0 : index
    %7 = vector.load %arg5[%c0_8, %c0_9] : memref<8x1xf32, #tpu.memory_space<vmem>>, vector<8x1xf32>
    %8 = vector.broadcast %7 : vector<8x1xf32> to vector<8x256xf32>
    %9 = arith.addf %6, %8 : vector<8x256xf32>
    %cst_10 = arith.constant 0.000000e+00 : f32
    %10 = vector.broadcast %cst_10 : f32 to vector<8x256xf32>
    %11 = arith.maximumf %9, %10 : vector<8x256xf32>
    %c0_11 = arith.constant 0 : index
    %c0_12 = arith.constant 0 : index
    %12 = vector.load %arg14[%c0_11, %c0_12] : memref<32x256xf32, #tpu.memory_space<vmem>>, vector<8x256xf32>
    tpu.vector_store %arg14[%c0_11, %c0_12], %11 {strides = array<i32>} : memref<32x256xf32, #tpu.memory_space<vmem>>, vector<8x256xf32>,
    %c17_i32 = arith.constant 17 : i32
    %13 = tpu.dynamic_rotate %2 by %c17_i32 dim 1 : vector<16x256xf32>, i32 -> vector<16x256xf32>
    %c1_i32 = arith.constant 1 : i32
    %14 = vector.broadcast %c1_i32 : i32 to vector<1x256xi32>
    %15 = arith.cmpi sge, %3, %14 : vector<1x256xi32>
    %c1_i32_13 = arith.constant 1 : i32
    %16 = vector.broadcast %c1_i32_13 : i32 to vector<1x256xi32>
    %17 = arith.cmpi sge, %4, %16 : vector<1x256xi32>
    %18 = arith.andi %15, %17 : vector<1x256xi1>
    %19 = arith.extui %18 : vector<1x256xi1> to vector<1x256xi32>
    %20 = arith.sitofp %19 : vector<1x256xi32> to vector<1x256xf32>
    %21 = vector.broadcast %20 : vector<1x256xf32> to vector<16x256xf32>
    %22 = arith.mulf %13, %21 : vector<16x256xf32>
    %c0_14 = arith.constant 0 : index
    %c0_15 = arith.constant 0 : index
    %23 = vector.load %arg13[%c0_14, %c0_15] : memref<144x256xf32, #tpu.memory_space<vmem>>, vector<16x256xf32>
    tpu.vector_store %arg13[%c0_14, %c0_15], %22 {strides = array<i32>} : memref<144x256xf32, #tpu.memory_space<vmem>>, vector<16x256xf32>,
    %c16_i32 = arith.constant 16 : i32
    %24 = tpu.dynamic_rotate %2 by %c16_i32 dim 1 : vector<16x256xf32>, i32 -> vector<16x256xf32>
    %c1_i32_16 = arith.constant 1 : i32
    %25 = vector.broadcast %c1_i32_16 : i32 to vector<1x256xi32>
    %26 = arith.cmpi sge, %3, %25 : vector<1x256xi32>
    %27 = arith.extui %26 : vector<1x256xi1> to vector<1x256xi32>
    %28 = arith.sitofp %27 : vector<1x256xi32> to vector<1x256xf32>
    %29 = vector.broadcast %28 : vector<1x256xf32> to vector<16x256xf32>
    %30 = arith.mulf %24, %29 : vector<16x256xf32>
    %c16 = arith.constant 16 : index
    %c0_17 = arith.constant 0 : index
    %31 = vector.load %arg13[%c16, %c0_17] : memref<144x256xf32, #tpu.memory_space<vmem>>, vector<16x256xf32>
    tpu.vector_store %arg13[%c16, %c0_17], %30 {strides = array<i32>} : memref<144x256xf32, #tpu.memory_space<vmem>>, vector<16x256xf32>,
    %c15_i32 = arith.constant 15 : i32
    %32 = tpu.dynamic_rotate %2 by %c15_i32 dim 1 : vector<16x256xf32>, i32 -> vector<16x256xf32>
    %c1_i32_18 = arith.constant 1 : i32
    %33 = vector.broadcast %c1_i32_18 : i32 to vector<1x256xi32>
    %34 = arith.cmpi sge, %3, %33 : vector<1x256xi32>
    %c15_i32_19 = arith.constant 15 : i32
    %35 = vector.broadcast %c15_i32_19 : i32 to vector<1x256xi32>
    %36 = arith.cmpi slt, %4, %35 : vector<1x256xi32>
    %37 = arith.andi %34, %36 : vector<1x256xi1>
    %38 = arith.extui %37 : vector<1x256xi1> to vector<1x256xi32>
    %39 = arith.sitofp %38 : vector<1x256xi32> to vector<1x256xf32>
    %40 = vector.broadcast %39 : vector<1x256xf32> to vector<16x256xf32>
    %41 = arith.mulf %32, %40 : vector<16x256xf32>
    %c32 = arith.constant 32 : index
    %c0_20 = arith.constant 0 : index
    %42 = vector.load %arg13[%c32, %c0_20] : memref<144x256xf32, #tpu.memory_space<vmem>>, vector<16x256xf32>
    tpu.vector_store %arg13[%c32, %c0_20], %41 {strides = array<i32>} : memref<144x256xf32, #tpu.memory_space<vmem>>, vector<16x256xf32>,
    %c1_i32_21 = arith.constant 1 : i32
    %43 = tpu.dynamic_rotate %2 by %c1_i32_21 dim 1 : vector<16x256xf32>, i32 -> vector<16x256xf32>
    %c1_i32_22 = arith.constant 1 : i32
    %44 = vector.broadcast %c1_i32_22 : i32 to vector<1x256xi32>
    %45 = arith.cmpi sge, %4, %44 : vector<1x256xi32>
    %46 = arith.extui %45 : vector<1x256xi1> to vector<1x256xi32>
    %47 = arith.sitofp %46 : vector<1x256xi32> to vector<1x256xf32>
    %48 = vector.broadcast %47 : vector<1x256xf32> to vector<16x256xf32>
    %49 = arith.mulf %43, %48 : vector<16x256xf32>
    %c48 = arith.constant 48 : index
    %c0_23 = arith.constant 0 : index
    %50 = vector.load %arg13[%c48, %c0_23] : memref<144x256xf32, #tpu.memory_space<vmem>>, vector<16x256xf32>
    tpu.vector_store %arg13[%c48, %c0_23], %49 {strides = array<i32>} : memref<144x256xf32, #tpu.memory_space<vmem>>, vector<16x256xf32>,
    %c64 = arith.constant 64 : index
    %c0_24 = arith.constant 0 : index
    %51 = vector.load %arg13[%c64, %c0_24] : memref<144x256xf32, #tpu.memory_space<vmem>>, vector<16x256xf32>
    tpu.vector_store %arg13[%c64, %c0_24], %2 {strides = array<i32>} : memref<144x256xf32, #tpu.memory_space<vmem>>, vector<16x256xf32>,
    %c255_i32 = arith.constant 255 : i32
    %52 = tpu.dynamic_rotate %2 by %c255_i32 dim 1 : vector<16x256xf32>, i32 -> vector<16x256xf32>
    %c15_i32_25 = arith.constant 15 : i32
    %53 = vector.broadcast %c15_i32_25 : i32 to vector<1x256xi32>
    %54 = arith.cmpi slt, %4, %53 : vector<1x256xi32>
    %55 = arith.extui %54 : vector<1x256xi1> to vector<1x256xi32>
    %56 = arith.sitofp %55 : vector<1x256xi32> to vector<1x256xf32>
    %57 = vector.broadcast %56 : vector<1x256xf32> to vector<16x256xf32>
    %58 = arith.mulf %52, %57 : vector<16x256xf32>
    %c80 = arith.constant 80 : index
    %c0_26 = arith.constant 0 : index
    %59 = vector.load %arg13[%c80, %c0_26] : memref<144x256xf32, #tpu.memory_space<vmem>>, vector<16x256xf32>
    tpu.vector_store %arg13[%c80, %c0_26], %58 {strides = array<i32>} : memref<144x256xf32, #tpu.memory_space<vmem>>, vector<16x256xf32>,
    %c241_i32 = arith.constant 241 : i32
    %60 = tpu.dynamic_rotate %2 by %c241_i32 dim 1 : vector<16x256xf32>, i32 -> vector<16x256xf32>
    %c15_i32_27 = arith.constant 15 : i32
    %61 = vector.broadcast %c15_i32_27 : i32 to vector<1x256xi32>
    %62 = arith.cmpi slt, %3, %61 : vector<1x256xi32>
    %c1_i32_28 = arith.constant 1 : i32
    %63 = vector.broadcast %c1_i32_28 : i32 to vector<1x256xi32>
    %64 = arith.cmpi sge, %4, %63 : vector<1x256xi32>
    %65 = arith.andi %62, %64 : vector<1x256xi1>
    %66 = arith.extui %65 : vector<1x256xi1> to vector<1x256xi32>
    %67 = arith.sitofp %66 : vector<1x256xi32> to vector<1x256xf32>
    %68 = vector.broadcast %67 : vector<1x256xf32> to vector<16x256xf32>
    %69 = arith.mulf %60, %68 : vector<16x256xf32>
    %c96 = arith.constant 96 : index
    %c0_29 = arith.constant 0 : index
    %70 = vector.load %arg13[%c96, %c0_29] : memref<144x256xf32, #tpu.memory_space<vmem>>, vector<16x256xf32>
    tpu.vector_store %arg13[%c96, %c0_29], %69 {strides = array<i32>} : memref<144x256xf32, #tpu.memory_space<vmem>>, vector<16x256xf32>,
    %c240_i32 = arith.constant 240 : i32
    %71 = tpu.dynamic_rotate %2 by %c240_i32 dim 1 : vector<16x256xf32>, i32 -> vector<16x256xf32>
    %c15_i32_30 = arith.constant 15 : i32
    %72 = vector.broadcast %c15_i32_30 : i32 to vector<1x256xi32>
    %73 = arith.cmpi slt, %3, %72 : vector<1x256xi32>
    %74 = arith.extui %73 : vector<1x256xi1> to vector<1x256xi32>
    %75 = arith.sitofp %74 : vector<1x256xi32> to vector<1x256xf32>
    %76 = vector.broadcast %75 : vector<1x256xf32> to vector<16x256xf32>
    %77 = arith.mulf %71, %76 : vector<16x256xf32>
    %c112 = arith.constant 112 : index
    %c0_31 = arith.constant 0 : index
    %78 = vector.load %arg13[%c112, %c0_31] : memref<144x256xf32, #tpu.memory_space<vmem>>, vector<16x256xf32>
    tpu.vector_store %arg13[%c112, %c0_31], %77 {strides = array<i32>} : memref<144x256xf32, #tpu.memory_space<vmem>>, vector<16x256xf32>,
    %c239_i32 = arith.constant 239 : i32
    %79 = tpu.dynamic_rotate %2 by %c239_i32 dim 1 : vector<16x256xf32>, i32 -> vector<16x256xf32>
    %c15_i32_32 = arith.constant 15 : i32
    %80 = vector.broadcast %c15_i32_32 : i32 to vector<1x256xi32>
    %81 = arith.cmpi slt, %3, %80 : vector<1x256xi32>
    %c15_i32_33 = arith.constant 15 : i32
    %82 = vector.broadcast %c15_i32_33 : i32 to vector<1x256xi32>
    %83 = arith.cmpi slt, %4, %82 : vector<1x256xi32>
    %84 = arith.andi %81, %83 : vector<1x256xi1>
    %85 = arith.extui %84 : vector<1x256xi1> to vector<1x256xi32>
    %86 = arith.sitofp %85 : vector<1x256xi32> to vector<1x256xf32>
    %87 = vector.broadcast %86 : vector<1x256xf32> to vector<16x256xf32>
    %88 = arith.mulf %79, %87 : vector<16x256xf32>
    %c128 = arith.constant 128 : index
    %c0_34 = arith.constant 0 : index
    %89 = vector.load %arg13[%c128, %c0_34] : memref<144x256xf32, #tpu.memory_space<vmem>>, vector<16x256xf32>
    tpu.vector_store %arg13[%c128, %c0_34], %88 {strides = array<i32>} : memref<144x256xf32, #tpu.memory_space<vmem>>, vector<16x256xf32>,
    %c0_35 = arith.constant 0 : index
    %c0_36 = arith.constant 0 : index
    %c0_37 = arith.constant 0 : index
    %90 = vector.load %arg6[%c0_35, %c0_36, %c0_37] : memref<3x8x144xbf16, #tpu.memory_space<vmem>>, vector<1x8x144xbf16>
    %91 = vector.shape_cast %90 : vector<1x8x144xbf16> to vector<8x144xbf16>
    %c0_38 = arith.constant 0 : index
    %c0_39 = arith.constant 0 : index
    %92 = vector.load %arg13[%c0_38, %c0_39] : memref<144x256xf32, #tpu.memory_space<vmem>>, vector<144x256xf32>
    %93 = arith.truncf %92 : vector<144x256xf32> to vector<144x256xbf16>
    %cst_40 = arith.constant dense<0.000000e+00> : vector<8x256xf32>
    %94 = tpu.matmul %91, %93, %cst_40 {dimension_numbers = #tpu.dot_dimension_numbers<[1], [0], [0], [1], [0, 0, 1, 1], [], []>} : vector<8x144xbf16>, vector<144x256xbf16>, vector<8x256xf32> -> vector<8x256xf32>
    %c0_41 = arith.constant 0 : index
    %c0_42 = arith.constant 0 : index
    %c0_43 = arith.constant 0 : index
    %95 = vector.load %arg7[%c0_41, %c0_42, %c0_43] : memref<3x8x1xf32, #tpu.memory_space<vmem>>, vector<1x8x1xf32>
    %96 = vector.shape_cast %95 : vector<1x8x1xf32> to vector<8x1xf32>
    %97 = vector.broadcast %96 : vector<8x1xf32> to vector<8x256xf32>
    %98 = arith.addf %94, %97 : vector<8x256xf32>
    %cst_44 = arith.constant 0.000000e+00 : f32
    %99 = vector.broadcast %cst_44 : f32 to vector<8x256xf32>
    %100 = arith.maximumf %98, %99 : vector<8x256xf32>
    %c8 = arith.constant 8 : index
    %c0_45 = arith.constant 0 : index
    %101 = vector.load %arg14[%c8, %c0_45] : memref<32x256xf32, #tpu.memory_space<vmem>>, vector<8x256xf32>
    tpu.vector_store %arg14[%c8, %c0_45], %100 {strides = array<i32>} : memref<32x256xf32, #tpu.memory_space<vmem>>, vector<8x256xf32>,
    %c34_i32 = arith.constant 34 : i32
    %102 = tpu.dynamic_rotate %2 by %c34_i32 dim 1 : vector<16x256xf32>, i32 -> vector<16x256xf32>
    %c2_i32 = arith.constant 2 : i32
    %103 = vector.broadcast %c2_i32 : i32 to vector<1x256xi32>
    %104 = arith.cmpi sge, %3, %103 : vector<1x256xi32>
    %c2_i32_46 = arith.constant 2 : i32
    %105 = vector.broadcast %c2_i32_46 : i32 to vector<1x256xi32>
    %106 = arith.cmpi sge, %4, %105 : vector<1x256xi32>
    %107 = arith.andi %104, %106 : vector<1x256xi1>
    %108 = arith.extui %107 : vector<1x256xi1> to vector<1x256xi32>
    %109 = arith.sitofp %108 : vector<1x256xi32> to vector<1x256xf32>
    %110 = vector.broadcast %109 : vector<1x256xf32> to vector<16x256xf32>
    %111 = arith.mulf %102, %110 : vector<16x256xf32>
    %c0_47 = arith.constant 0 : index
    %c0_48 = arith.constant 0 : index
    %112 = vector.load %arg13[%c0_47, %c0_48] : memref<144x256xf32, #tpu.memory_space<vmem>>, vector<16x256xf32>
    tpu.vector_store %arg13[%c0_47, %c0_48], %111 {strides = array<i32>} : memref<144x256xf32, #tpu.memory_space<vmem>>, vector<16x256xf32>,
    %c32_i32 = arith.constant 32 : i32
    %113 = tpu.dynamic_rotate %2 by %c32_i32 dim 1 : vector<16x256xf32>, i32 -> vector<16x256xf32>
    %c2_i32_49 = arith.constant 2 : i32
    %114 = vector.broadcast %c2_i32_49 : i32 to vector<1x256xi32>
    %115 = arith.cmpi sge, %3, %114 : vector<1x256xi32>
    %116 = arith.extui %115 : vector<1x256xi1> to vector<1x256xi32>
    %117 = arith.sitofp %116 : vector<1x256xi32> to vector<1x256xf32>
    %118 = vector.broadcast %117 : vector<1x256xf32> to vector<16x256xf32>
    %119 = arith.mulf %113, %118 : vector<16x256xf32>
    %c16_50 = arith.constant 16 : index
    %c0_51 = arith.constant 0 : index
    %120 = vector.load %arg13[%c16_50, %c0_51] : memref<144x256xf32, #tpu.memory_space<vmem>>, vector<16x256xf32>
    tpu.vector_store %arg13[%c16_50, %c0_51], %119 {strides = array<i32>} : memref<144x256xf32, #tpu.memory_space<vmem>>, vector<16x256xf32>,
    %c30_i32 = arith.constant 30 : i32
    %121 = tpu.dynamic_rotate %2 by %c30_i32 dim 1 : vector<16x256xf32>, i32 -> vector<16x256xf32>
    %c2_i32_52 = arith.constant 2 : i32
    %122 = vector.broadcast %c2_i32_52 : i32 to vector<1x256xi32>
    %123 = arith.cmpi sge, %3, %122 : vector<1x256xi32>
    %c14_i32 = arith.constant 14 : i32
    %124 = vector.broadcast %c14_i32 : i32 to vector<1x256xi32>
    %125 = arith.cmpi slt, %4, %124 : vector<1x256xi32>
    %126 = arith.andi %123, %125 : vector<1x256xi1>
    %127 = arith.extui %126 : vector<1x256xi1> to vector<1x256xi32>
    %128 = arith.sitofp %127 : vector<1x256xi32> to vector<1x256xf32>
    %129 = vector.broadcast %128 : vector<1x256xf32> to vector<16x256xf32>
    %130 = arith.mulf %121, %129 : vector<16x256xf32>
    %c32_53 = arith.constant 32 : index
    %c0_54 = arith.constant 0 : index
    %131 = vector.load %arg13[%c32_53, %c0_54] : memref<144x256xf32, #tpu.memory_space<vmem>>, vector<16x256xf32>
    tpu.vector_store %arg13[%c32_53, %c0_54], %130 {strides = array<i32>} : memref<144x256xf32, #tpu.memory_space<vmem>>, vector<16x256xf32>,
    %c2_i32_55 = arith.constant 2 : i32
    %132 = tpu.dynamic_rotate %2 by %c2_i32_55 dim 1 : vector<16x256xf32>, i32 -> vector<16x256xf32>
    %c2_i32_56 = arith.constant 2 : i32
    %133 = vector.broadcast %c2_i32_56 : i32 to vector<1x256xi32>
    %134 = arith.cmpi sge, %4, %133 : vector<1x256xi32>
    %135 = arith.extui %134 : vector<1x256xi1> to vector<1x256xi32>
    %136 = arith.sitofp %135 : vector<1x256xi32> to vector<1x256xf32>
    %137 = vector.broadcast %136 : vector<1x256xf32> to vector<16x256xf32>
    %138 = arith.mulf %132, %137 : vector<16x256xf32>
    %c48_57 = arith.constant 48 : index
    %c0_58 = arith.constant 0 : index
    %139 = vector.load %arg13[%c48_57, %c0_58] : memref<144x256xf32, #tpu.memory_space<vmem>>, vector<16x256xf32>
    tpu.vector_store %arg13[%c48_57, %c0_58], %138 {strides = array<i32>} : memref<144x256xf32, #tpu.memory_space<vmem>>, vector<16x256xf32>,
    %c64_59 = arith.constant 64 : index
    %c0_60 = arith.constant 0 : index
    %140 = vector.load %arg13[%c64_59, %c0_60] : memref<144x256xf32, #tpu.memory_space<vmem>>, vector<16x256xf32>
    tpu.vector_store %arg13[%c64_59, %c0_60], %2 {strides = array<i32>} : memref<144x256xf32, #tpu.memory_space<vmem>>, vector<16x256xf32>,
    %c254_i32 = arith.constant 254 : i32
    %141 = tpu.dynamic_rotate %2 by %c254_i32 dim 1 : vector<16x256xf32>, i32 -> vector<16x256xf32>
    %c14_i32_61 = arith.constant 14 : i32
    %142 = vector.broadcast %c14_i32_61 : i32 to vector<1x256xi32>
    %143 = arith.cmpi slt, %4, %142 : vector<1x256xi32>
    %144 = arith.extui %143 : vector<1x256xi1> to vector<1x256xi32>
    %145 = arith.sitofp %144 : vector<1x256xi32> to vector<1x256xf32>
    %146 = vector.broadcast %145 : vector<1x256xf32> to vector<16x256xf32>
    %147 = arith.mulf %141, %146 : vector<16x256xf32>
    %c80_62 = arith.constant 80 : index
    %c0_63 = arith.constant 0 : index
    %148 = vector.load %arg13[%c80_62, %c0_63] : memref<144x256xf32, #tpu.memory_space<vmem>>, vector<16x256xf32>
    tpu.vector_store %arg13[%c80_62, %c0_63], %147 {strides = array<i32>} : memref<144x256xf32, #tpu.memory_space<vmem>>, vector<16x256xf32>,
    %c226_i32 = arith.constant 226 : i32
    %149 = tpu.dynamic_rotate %2 by %c226_i32 dim 1 : vector<16x256xf32>, i32 -> vector<16x256xf32>
    %c14_i32_64 = arith.constant 14 : i32
    %150 = vector.broadcast %c14_i32_64 : i32 to vector<1x256xi32>
    %151 = arith.cmpi slt, %3, %150 : vector<1x256xi32>
    %c2_i32_65 = arith.constant 2 : i32
    %152 = vector.broadcast %c2_i32_65 : i32 to vector<1x256xi32>
    %153 = arith.cmpi sge, %4, %152 : vector<1x256xi32>
    %154 = arith.andi %151, %153 : vector<1x256xi1>
    %155 = arith.extui %154 : vector<1x256xi1> to vector<1x256xi32>
    %156 = arith.sitofp %155 : vector<1x256xi32> to vector<1x256xf32>
    %157 = vector.broadcast %156 : vector<1x256xf32> to vector<16x256xf32>
    %158 = arith.mulf %149, %157 : vector<16x256xf32>
    %c96_66 = arith.constant 96 : index
    %c0_67 = arith.constant 0 : index
    %159 = vector.load %arg13[%c96_66, %c0_67] : memref<144x256xf32, #tpu.memory_space<vmem>>, vector<16x256xf32>
    tpu.vector_store %arg13[%c96_66, %c0_67], %158 {strides = array<i32>} : memref<144x256xf32, #tpu.memory_space<vmem>>, vector<16x256xf32>,
    %c224_i32 = arith.constant 224 : i32
    %160 = tpu.dynamic_rotate %2 by %c224_i32 dim 1 : vector<16x256xf32>, i32 -> vector<16x256xf32>
    %c14_i32_68 = arith.constant 14 : i32
    %161 = vector.broadcast %c14_i32_68 : i32 to vector<1x256xi32>
    %162 = arith.cmpi slt, %3, %161 : vector<1x256xi32>
    %163 = arith.extui %162 : vector<1x256xi1> to vector<1x256xi32>
    %164 = arith.sitofp %163 : vector<1x256xi32> to vector<1x256xf32>
    %165 = vector.broadcast %164 : vector<1x256xf32> to vector<16x256xf32>
    %166 = arith.mulf %160, %165 : vector<16x256xf32>
    %c112_69 = arith.constant 112 : index
    %c0_70 = arith.constant 0 : index
    %167 = vector.load %arg13[%c112_69, %c0_70] : memref<144x256xf32, #tpu.memory_space<vmem>>, vector<16x256xf32>
    tpu.vector_store %arg13[%c112_69, %c0_70], %166 {strides = array<i32>} : memref<144x256xf32, #tpu.memory_space<vmem>>, vector<16x256xf32>,
    %c222_i32 = arith.constant 222 : i32
    %168 = tpu.dynamic_rotate %2 by %c222_i32 dim 1 : vector<16x256xf32>, i32 -> vector<16x256xf32>
    %c14_i32_71 = arith.constant 14 : i32
    %169 = vector.broadcast %c14_i32_71 : i32 to vector<1x256xi32>
    %170 = arith.cmpi slt, %3, %169 : vector<1x256xi32>
    %c14_i32_72 = arith.constant 14 : i32
    %171 = vector.broadcast %c14_i32_72 : i32 to vector<1x256xi32>
    %172 = arith.cmpi slt, %4, %171 : vector<1x256xi32>
    %173 = arith.andi %170, %172 : vector<1x256xi1>
    %174 = arith.extui %173 : vector<1x256xi1> to vector<1x256xi32>
    %175 = arith.sitofp %174 : vector<1x256xi32> to vector<1x256xf32>
    %176 = vector.broadcast %175 : vector<1x256xf32> to vector<16x256xf32>
    %177 = arith.mulf %168, %176 : vector<16x256xf32>
    %c128_73 = arith.constant 128 : index
    %c0_74 = arith.constant 0 : index
    %178 = vector.load %arg13[%c128_73, %c0_74] : memref<144x256xf32, #tpu.memory_space<vmem>>, vector<16x256xf32>
    tpu.vector_store %arg13[%c128_73, %c0_74], %177 {strides = array<i32>} : memref<144x256xf32, #tpu.memory_space<vmem>>, vector<16x256xf32>,
    %c1 = arith.constant 1 : index
    %c0_75 = arith.constant 0 : index
    %c0_76 = arith.constant 0 : index
    %179 = vector.load %arg6[%c1, %c0_75, %c0_76] : memref<3x8x144xbf16, #tpu.memory_space<vmem>>, vector<1x8x144xbf16>
    %180 = vector.shape_cast %179 : vector<1x8x144xbf16> to vector<8x144xbf16>
    %c0_77 = arith.constant 0 : index
    %c0_78 = arith.constant 0 : index
    %181 = vector.load %arg13[%c0_77, %c0_78] : memref<144x256xf32, #tpu.memory_space<vmem>>, vector<144x256xf32>
    %182 = arith.truncf %181 : vector<144x256xf32> to vector<144x256xbf16>
    %cst_79 = arith.constant dense<0.000000e+00> : vector<8x256xf32>
    %183 = tpu.matmul %180, %182, %cst_79 {dimension_numbers = #tpu.dot_dimension_numbers<[1], [0], [0], [1], [0, 0, 1, 1], [], []>} : vector<8x144xbf16>, vector<144x256xbf16>, vector<8x256xf32> -> vector<8x256xf32>
    %c1_80 = arith.constant 1 : index
    %c0_81 = arith.constant 0 : index
    %c0_82 = arith.constant 0 : index
    %184 = vector.load %arg7[%c1_80, %c0_81, %c0_82] : memref<3x8x1xf32, #tpu.memory_space<vmem>>, vector<1x8x1xf32>
    %185 = vector.shape_cast %184 : vector<1x8x1xf32> to vector<8x1xf32>
    %186 = vector.broadcast %185 : vector<8x1xf32> to vector<8x256xf32>
    %187 = arith.addf %183, %186 : vector<8x256xf32>
    %cst_83 = arith.constant 0.000000e+00 : f32
    %188 = vector.broadcast %cst_83 : f32 to vector<8x256xf32>
    %189 = arith.maximumf %187, %188 : vector<8x256xf32>
    %c16_84 = arith.constant 16 : index
    %c0_85 = arith.constant 0 : index
    %190 = vector.load %arg14[%c16_84, %c0_85] : memref<32x256xf32, #tpu.memory_space<vmem>>, vector<8x256xf32>
    tpu.vector_store %arg14[%c16_84, %c0_85], %189 {strides = array<i32>} : memref<32x256xf32, #tpu.memory_space<vmem>>, vector<8x256xf32>,
    %c51_i32 = arith.constant 51 : i32
    %191 = tpu.dynamic_rotate %2 by %c51_i32 dim 1 : vector<16x256xf32>, i32 -> vector<16x256xf32>
    %c3_i32 = arith.constant 3 : i32
    %192 = vector.broadcast %c3_i32 : i32 to vector<1x256xi32>
    %193 = arith.cmpi sge, %3, %192 : vector<1x256xi32>
    %c3_i32_86 = arith.constant 3 : i32
    %194 = vector.broadcast %c3_i32_86 : i32 to vector<1x256xi32>
    %195 = arith.cmpi sge, %4, %194 : vector<1x256xi32>
    %196 = arith.andi %193, %195 : vector<1x256xi1>
    %197 = arith.extui %196 : vector<1x256xi1> to vector<1x256xi32>
    %198 = arith.sitofp %197 : vector<1x256xi32> to vector<1x256xf32>
    %199 = vector.broadcast %198 : vector<1x256xf32> to vector<16x256xf32>
    %200 = arith.mulf %191, %199 : vector<16x256xf32>
    %c0_87 = arith.constant 0 : index
    %c0_88 = arith.constant 0 : index
    %201 = vector.load %arg13[%c0_87, %c0_88] : memref<144x256xf32, #tpu.memory_space<vmem>>, vector<16x256xf32>
    tpu.vector_store %arg13[%c0_87, %c0_88], %200 {strides = array<i32>} : memref<144x256xf32, #tpu.memory_space<vmem>>, vector<16x256xf32>,
    %c48_i32 = arith.constant 48 : i32
    %202 = tpu.dynamic_rotate %2 by %c48_i32 dim 1 : vector<16x256xf32>, i32 -> vector<16x256xf32>
    %c3_i32_89 = arith.constant 3 : i32
    %203 = vector.broadcast %c3_i32_89 : i32 to vector<1x256xi32>
    %204 = arith.cmpi sge, %3, %203 : vector<1x256xi32>
    %205 = arith.extui %204 : vector<1x256xi1> to vector<1x256xi32>
    %206 = arith.sitofp %205 : vector<1x256xi32> to vector<1x256xf32>
    %207 = vector.broadcast %206 : vector<1x256xf32> to vector<16x256xf32>
    %208 = arith.mulf %202, %207 : vector<16x256xf32>
    %c16_90 = arith.constant 16 : index
    %c0_91 = arith.constant 0 : index
    %209 = vector.load %arg13[%c16_90, %c0_91] : memref<144x256xf32, #tpu.memory_space<vmem>>, vector<16x256xf32>
    tpu.vector_store %arg13[%c16_90, %c0_91], %208 {strides = array<i32>} : memref<144x256xf32, #tpu.memory_space<vmem>>, vector<16x256xf32>,
    %c45_i32 = arith.constant 45 : i32
    %210 = tpu.dynamic_rotate %2 by %c45_i32 dim 1 : vector<16x256xf32>, i32 -> vector<16x256xf32>
    %c3_i32_92 = arith.constant 3 : i32
    %211 = vector.broadcast %c3_i32_92 : i32 to vector<1x256xi32>
    %212 = arith.cmpi sge, %3, %211 : vector<1x256xi32>
    %c13_i32 = arith.constant 13 : i32
    %213 = vector.broadcast %c13_i32 : i32 to vector<1x256xi32>
    %214 = arith.cmpi slt, %4, %213 : vector<1x256xi32>
    %215 = arith.andi %212, %214 : vector<1x256xi1>
    %216 = arith.extui %215 : vector<1x256xi1> to vector<1x256xi32>
    %217 = arith.sitofp %216 : vector<1x256xi32> to vector<1x256xf32>
    %218 = vector.broadcast %217 : vector<1x256xf32> to vector<16x256xf32>
    %219 = arith.mulf %210, %218 : vector<16x256xf32>
    %c32_93 = arith.constant 32 : index
    %c0_94 = arith.constant 0 : index
    %220 = vector.load %arg13[%c32_93, %c0_94] : memref<144x256xf32, #tpu.memory_space<vmem>>, vector<16x256xf32>
    tpu.vector_store %arg13[%c32_93, %c0_94], %219 {strides = array<i32>} : memref<144x256xf32, #tpu.memory_space<vmem>>, vector<16x256xf32>,
    %c3_i32_95 = arith.constant 3 : i32
    %221 = tpu.dynamic_rotate %2 by %c3_i32_95 dim 1 : vector<16x256xf32>, i32 -> vector<16x256xf32>
    %c3_i32_96 = arith.constant 3 : i32
    %222 = vector.broadcast %c3_i32_96 : i32 to vector<1x256xi32>
    %223 = arith.cmpi sge, %4, %222 : vector<1x256xi32>
    %224 = arith.extui %223 : vector<1x256xi1> to vector<1x256xi32>
    %225 = arith.sitofp %224 : vector<1x256xi32> to vector<1x256xf32>
    %226 = vector.broadcast %225 : vector<1x256xf32> to vector<16x256xf32>
    %227 = arith.mulf %221, %226 : vector<16x256xf32>
    %c48_97 = arith.constant 48 : index
    %c0_98 = arith.constant 0 : index
    %228 = vector.load %arg13[%c48_97, %c0_98] : memref<144x256xf32, #tpu.memory_space<vmem>>, vector<16x256xf32>
    tpu.vector_store %arg13[%c48_97, %c0_98], %227 {strides = array<i32>} : memref<144x256xf32, #tpu.memory_space<vmem>>, vector<16x256xf32>,
    %c64_99 = arith.constant 64 : index
    %c0_100 = arith.constant 0 : index
    %229 = vector.load %arg13[%c64_99, %c0_100] : memref<144x256xf32, #tpu.memory_space<vmem>>, vector<16x256xf32>
    tpu.vector_store %arg13[%c64_99, %c0_100], %2 {strides = array<i32>} : memref<144x256xf32, #tpu.memory_space<vmem>>, vector<16x256xf32>,
    %c253_i32 = arith.constant 253 : i32
    %230 = tpu.dynamic_rotate %2 by %c253_i32 dim 1 : vector<16x256xf32>, i32 -> vector<16x256xf32>
    %c13_i32_101 = arith.constant 13 : i32
    %231 = vector.broadcast %c13_i32_101 : i32 to vector<1x256xi32>
    %232 = arith.cmpi slt, %4, %231 : vector<1x256xi32>
    %233 = arith.extui %232 : vector<1x256xi1> to vector<1x256xi32>
    %234 = arith.sitofp %233 : vector<1x256xi32> to vector<1x256xf32>
    %235 = vector.broadcast %234 : vector<1x256xf32> to vector<16x256xf32>
    %236 = arith.mulf %230, %235 : vector<16x256xf32>
    %c80_102 = arith.constant 80 : index
    %c0_103 = arith.constant 0 : index
    %237 = vector.load %arg13[%c80_102, %c0_103] : memref<144x256xf32, #tpu.memory_space<vmem>>, vector<16x256xf32>
    tpu.vector_store %arg13[%c80_102, %c0_103], %236 {strides = array<i32>} : memref<144x256xf32, #tpu.memory_space<vmem>>, vector<16x256xf32>,
    %c211_i32 = arith.constant 211 : i32
    %238 = tpu.dynamic_rotate %2 by %c211_i32 dim 1 : vector<16x256xf32>, i32 -> vector<16x256xf32>
    %c13_i32_104 = arith.constant 13 : i32
    %239 = vector.broadcast %c13_i32_104 : i32 to vector<1x256xi32>
    %240 = arith.cmpi slt, %3, %239 : vector<1x256xi32>
    %c3_i32_105 = arith.constant 3 : i32
    %241 = vector.broadcast %c3_i32_105 : i32 to vector<1x256xi32>
    %242 = arith.cmpi sge, %4, %241 : vector<1x256xi32>
    %243 = arith.andi %240, %242 : vector<1x256xi1>
    %244 = arith.extui %243 : vector<1x256xi1> to vector<1x256xi32>
    %245 = arith.sitofp %244 : vector<1x256xi32> to vector<1x256xf32>
    %246 = vector.broadcast %245 : vector<1x256xf32> to vector<16x256xf32>
    %247 = arith.mulf %238, %246 : vector<16x256xf32>
    %c96_106 = arith.constant 96 : index
    %c0_107 = arith.constant 0 : index
    %248 = vector.load %arg13[%c96_106, %c0_107] : memref<144x256xf32, #tpu.memory_space<vmem>>, vector<16x256xf32>
    tpu.vector_store %arg13[%c96_106, %c0_107], %247 {strides = array<i32>} : memref<144x256xf32, #tpu.memory_space<vmem>>, vector<16x256xf32>,
    %c208_i32 = arith.constant 208 : i32
    %249 = tpu.dynamic_rotate %2 by %c208_i32 dim 1 : vector<16x256xf32>, i32 -> vector<16x256xf32>
    %c13_i32_108 = arith.constant 13 : i32
    %250 = vector.broadcast %c13_i32_108 : i32 to vector<1x256xi32>
    %251 = arith.cmpi slt, %3, %250 : vector<1x256xi32>
    %252 = arith.extui %251 : vector<1x256xi1> to vector<1x256xi32>
    %253 = arith.sitofp %252 : vector<1x256xi32> to vector<1x256xf32>
    %254 = vector.broadcast %253 : vector<1x256xf32> to vector<16x256xf32>
    %255 = arith.mulf %249, %254 : vector<16x256xf32>
    %c112_109 = arith.constant 112 : index
    %c0_110 = arith.constant 0 : index
    %256 = vector.load %arg13[%c112_109, %c0_110] : memref<144x256xf32, #tpu.memory_space<vmem>>, vector<16x256xf32>
    tpu.vector_store %arg13[%c112_109, %c0_110], %255 {strides = array<i32>} : memref<144x256xf32, #tpu.memory_space<vmem>>, vector<16x256xf32>,
    %c205_i32 = arith.constant 205 : i32
    %257 = tpu.dynamic_rotate %2 by %c205_i32 dim 1 : vector<16x256xf32>, i32 -> vector<16x256xf32>
    %c13_i32_111 = arith.constant 13 : i32
    %258 = vector.broadcast %c13_i32_111 : i32 to vector<1x256xi32>
    %259 = arith.cmpi slt, %3, %258 : vector<1x256xi32>
    %c13_i32_112 = arith.constant 13 : i32
    %260 = vector.broadcast %c13_i32_112 : i32 to vector<1x256xi32>
    %261 = arith.cmpi slt, %4, %260 : vector<1x256xi32>
    %262 = arith.andi %259, %261 : vector<1x256xi1>
    %263 = arith.extui %262 : vector<1x256xi1> to vector<1x256xi32>
    %264 = arith.sitofp %263 : vector<1x256xi32> to vector<1x256xf32>
    %265 = vector.broadcast %264 : vector<1x256xf32> to vector<16x256xf32>
    %266 = arith.mulf %257, %265 : vector<16x256xf32>
    %c128_113 = arith.constant 128 : index
    %c0_114 = arith.constant 0 : index
    %267 = vector.load %arg13[%c128_113, %c0_114] : memref<144x256xf32, #tpu.memory_space<vmem>>, vector<16x256xf32>
    tpu.vector_store %arg13[%c128_113, %c0_114], %266 {strides = array<i32>} : memref<144x256xf32, #tpu.memory_space<vmem>>, vector<16x256xf32>,
    %c2 = arith.constant 2 : index
    %c0_115 = arith.constant 0 : index
    %c0_116 = arith.constant 0 : index
    %268 = vector.load %arg6[%c2, %c0_115, %c0_116] : memref<3x8x144xbf16, #tpu.memory_space<vmem>>, vector<1x8x144xbf16>
    %269 = vector.shape_cast %268 : vector<1x8x144xbf16> to vector<8x144xbf16>
    %c0_117 = arith.constant 0 : index
    %c0_118 = arith.constant 0 : index
    %270 = vector.load %arg13[%c0_117, %c0_118] : memref<144x256xf32, #tpu.memory_space<vmem>>, vector<144x256xf32>
    %271 = arith.truncf %270 : vector<144x256xf32> to vector<144x256xbf16>
    %cst_119 = arith.constant dense<0.000000e+00> : vector<8x256xf32>
    %272 = tpu.matmul %269, %271, %cst_119 {dimension_numbers = #tpu.dot_dimension_numbers<[1], [0], [0], [1], [0, 0, 1, 1], [], []>} : vector<8x144xbf16>, vector<144x256xbf16>, vector<8x256xf32> -> vector<8x256xf32>
    %c2_120 = arith.constant 2 : index
    %c0_121 = arith.constant 0 : index
    %c0_122 = arith.constant 0 : index
    %273 = vector.load %arg7[%c2_120, %c0_121, %c0_122] : memref<3x8x1xf32, #tpu.memory_space<vmem>>, vector<1x8x1xf32>
    %274 = vector.shape_cast %273 : vector<1x8x1xf32> to vector<8x1xf32>
    %275 = vector.broadcast %274 : vector<8x1xf32> to vector<8x256xf32>
    %276 = arith.addf %272, %275 : vector<8x256xf32>
    %cst_123 = arith.constant 0.000000e+00 : f32
    %277 = vector.broadcast %cst_123 : f32 to vector<8x256xf32>
    %278 = arith.maximumf %276, %277 : vector<8x256xf32>
    %c24 = arith.constant 24 : index
    %c0_124 = arith.constant 0 : index
    %279 = vector.load %arg14[%c24, %c0_124] : memref<32x256xf32, #tpu.memory_space<vmem>>, vector<8x256xf32>
    tpu.vector_store %arg14[%c24, %c0_124], %278 {strides = array<i32>} : memref<32x256xf32, #tpu.memory_space<vmem>>, vector<8x256xf32>,
    %c0_125 = arith.constant 0 : index
    %c0_126 = arith.constant 0 : index
    %280 = vector.load %arg8[%c0_125, %c0_126] : memref<8x32xbf16, #tpu.memory_space<vmem>>, vector<8x32xbf16>
    %c0_127 = arith.constant 0 : index
    %c0_128 = arith.constant 0 : index
    %281 = vector.load %arg14[%c0_127, %c0_128] : memref<32x256xf32, #tpu.memory_space<vmem>>, vector<32x256xf32>
    %282 = arith.truncf %281 : vector<32x256xf32> to vector<32x256xbf16>
    %cst_129 = arith.constant dense<0.000000e+00> : vector<8x256xf32>
    %283 = tpu.matmul %280, %282, %cst_129 {dimension_numbers = #tpu.dot_dimension_numbers<[1], [0], [0], [1], [0, 0, 1, 1], [], []>} : vector<8x32xbf16>, vector<32x256xbf16>, vector<8x256xf32> -> vector<8x256xf32>
    %c0_130 = arith.constant 0 : index
    %c0_131 = arith.constant 0 : index
    %c0_132 = arith.constant 0 : index
    %284 = vector.load %arg9[%c0_130, %c0_131, %c0_132] : memref<1x8x1xf32, #tpu.memory_space<vmem>>, vector<1x8x1xf32>
    %285 = vector.shape_cast %284 : vector<1x8x1xf32> to vector<8x1xf32>
    %286 = vector.broadcast %285 : vector<8x1xf32> to vector<8x256xf32>
    %287 = arith.addf %283, %286 : vector<8x256xf32>
    %cst_133 = arith.constant 0.000000e+00 : f32
    %288 = vector.broadcast %cst_133 : f32 to vector<8x256xf32>
    %289 = arith.maximumf %287, %288 : vector<8x256xf32>
    %c17_i32_134 = arith.constant 17 : i32
    %290 = tpu.dynamic_rotate %289 by %c17_i32_134 dim 1 : vector<8x256xf32>, i32 -> vector<8x256xf32>
    %c1_i32_135 = arith.constant 1 : i32
    %291 = vector.broadcast %c1_i32_135 : i32 to vector<1x256xi32>
    %292 = arith.cmpi sge, %3, %291 : vector<1x256xi32>
    %c1_i32_136 = arith.constant 1 : i32
    %293 = vector.broadcast %c1_i32_136 : i32 to vector<1x256xi32>
    %294 = arith.cmpi sge, %4, %293 : vector<1x256xi32>
    %295 = arith.andi %292, %294 : vector<1x256xi1>
    %296 = arith.extui %295 : vector<1x256xi1> to vector<1x256xi32>
    %297 = arith.sitofp %296 : vector<1x256xi32> to vector<1x256xf32>
    %298 = vector.broadcast %297 : vector<1x256xf32> to vector<8x256xf32>
    %299 = arith.mulf %290, %298 : vector<8x256xf32>
    %c0_137 = arith.constant 0 : index
    %c0_138 = arith.constant 0 : index
    %300 = vector.load %arg13[%c0_137, %c0_138] : memref<144x256xf32, #tpu.memory_space<vmem>>, vector<8x256xf32>
    tpu.vector_store %arg13[%c0_137, %c0_138], %299 {strides = array<i32>} : memref<144x256xf32, #tpu.memory_space<vmem>>, vector<8x256xf32>,
    %c16_i32_139 = arith.constant 16 : i32
    %301 = tpu.dynamic_rotate %289 by %c16_i32_139 dim 1 : vector<8x256xf32>, i32 -> vector<8x256xf32>
    %c1_i32_140 = arith.constant 1 : i32
    %302 = vector.broadcast %c1_i32_140 : i32 to vector<1x256xi32>
    %303 = arith.cmpi sge, %3, %302 : vector<1x256xi32>
    %304 = arith.extui %303 : vector<1x256xi1> to vector<1x256xi32>
    %305 = arith.sitofp %304 : vector<1x256xi32> to vector<1x256xf32>
    %306 = vector.broadcast %305 : vector<1x256xf32> to vector<8x256xf32>
    %307 = arith.mulf %301, %306 : vector<8x256xf32>
    %c8_141 = arith.constant 8 : index
    %c0_142 = arith.constant 0 : index
    %308 = vector.load %arg13[%c8_141, %c0_142] : memref<144x256xf32, #tpu.memory_space<vmem>>, vector<8x256xf32>
    tpu.vector_store %arg13[%c8_141, %c0_142], %307 {strides = array<i32>} : memref<144x256xf32, #tpu.memory_space<vmem>>, vector<8x256xf32>,
    %c15_i32_143 = arith.constant 15 : i32
    %309 = tpu.dynamic_rotate %289 by %c15_i32_143 dim 1 : vector<8x256xf32>, i32 -> vector<8x256xf32>
    %c1_i32_144 = arith.constant 1 : i32
    %310 = vector.broadcast %c1_i32_144 : i32 to vector<1x256xi32>
    %311 = arith.cmpi sge, %3, %310 : vector<1x256xi32>
    %c15_i32_145 = arith.constant 15 : i32
    %312 = vector.broadcast %c15_i32_145 : i32 to vector<1x256xi32>
    %313 = arith.cmpi slt, %4, %312 : vector<1x256xi32>
    %314 = arith.andi %311, %313 : vector<1x256xi1>
    %315 = arith.extui %314 : vector<1x256xi1> to vector<1x256xi32>
    %316 = arith.sitofp %315 : vector<1x256xi32> to vector<1x256xf32>
    %317 = vector.broadcast %316 : vector<1x256xf32> to vector<8x256xf32>
    %318 = arith.mulf %309, %317 : vector<8x256xf32>
    %c16_146 = arith.constant 16 : index
    %c0_147 = arith.constant 0 : index
    %319 = vector.load %arg13[%c16_146, %c0_147] : memref<144x256xf32, #tpu.memory_space<vmem>>, vector<8x256xf32>
    tpu.vector_store %arg13[%c16_146, %c0_147], %318 {strides = array<i32>} : memref<144x256xf32, #tpu.memory_space<vmem>>, vector<8x256xf32>,
    %c1_i32_148 = arith.constant 1 : i32
    %320 = tpu.dynamic_rotate %289 by %c1_i32_148 dim 1 : vector<8x256xf32>, i32 -> vector<8x256xf32>
    %c1_i32_149 = arith.constant 1 : i32
    %321 = vector.broadcast %c1_i32_149 : i32 to vector<1x256xi32>
    %322 = arith.cmpi sge, %4, %321 : vector<1x256xi32>
    %323 = arith.extui %322 : vector<1x256xi1> to vector<1x256xi32>
    %324 = arith.sitofp %323 : vector<1x256xi32> to vector<1x256xf32>
    %325 = vector.broadcast %324 : vector<1x256xf32> to vector<8x256xf32>
    %326 = arith.mulf %320, %325 : vector<8x256xf32>
    %c24_150 = arith.constant 24 : index
    %c0_151 = arith.constant 0 : index
    %327 = vector.load %arg13[%c24_150, %c0_151] : memref<144x256xf32, #tpu.memory_space<vmem>>, vector<8x256xf32>
    tpu.vector_store %arg13[%c24_150, %c0_151], %326 {strides = array<i32>} : memref<144x256xf32, #tpu.memory_space<vmem>>, vector<8x256xf32>,
    %c32_152 = arith.constant 32 : index
    %c0_153 = arith.constant 0 : index
    %328 = vector.load %arg13[%c32_152, %c0_153] : memref<144x256xf32, #tpu.memory_space<vmem>>, vector<8x256xf32>
    tpu.vector_store %arg13[%c32_152, %c0_153], %289 {strides = array<i32>} : memref<144x256xf32, #tpu.memory_space<vmem>>, vector<8x256xf32>,
    %c255_i32_154 = arith.constant 255 : i32
    %329 = tpu.dynamic_rotate %289 by %c255_i32_154 dim 1 : vector<8x256xf32>, i32 -> vector<8x256xf32>
    %c15_i32_155 = arith.constant 15 : i32
    %330 = vector.broadcast %c15_i32_155 : i32 to vector<1x256xi32>
    %331 = arith.cmpi slt, %4, %330 : vector<1x256xi32>
    %332 = arith.extui %331 : vector<1x256xi1> to vector<1x256xi32>
    %333 = arith.sitofp %332 : vector<1x256xi32> to vector<1x256xf32>
    %334 = vector.broadcast %333 : vector<1x256xf32> to vector<8x256xf32>
    %335 = arith.mulf %329, %334 : vector<8x256xf32>
    %c40 = arith.constant 40 : index
    %c0_156 = arith.constant 0 : index
    %336 = vector.load %arg13[%c40, %c0_156] : memref<144x256xf32, #tpu.memory_space<vmem>>, vector<8x256xf32>
    tpu.vector_store %arg13[%c40, %c0_156], %335 {strides = array<i32>} : memref<144x256xf32, #tpu.memory_space<vmem>>, vector<8x256xf32>,
    %c241_i32_157 = arith.constant 241 : i32
    %337 = tpu.dynamic_rotate %289 by %c241_i32_157 dim 1 : vector<8x256xf32>, i32 -> vector<8x256xf32>
    %c15_i32_158 = arith.constant 15 : i32
    %338 = vector.broadcast %c15_i32_158 : i32 to vector<1x256xi32>
    %339 = arith.cmpi slt, %3, %338 : vector<1x256xi32>
    %c1_i32_159 = arith.constant 1 : i32
    %340 = vector.broadcast %c1_i32_159 : i32 to vector<1x256xi32>
    %341 = arith.cmpi sge, %4, %340 : vector<1x256xi32>
    %342 = arith.andi %339, %341 : vector<1x256xi1>
    %343 = arith.extui %342 : vector<1x256xi1> to vector<1x256xi32>
    %344 = arith.sitofp %343 : vector<1x256xi32> to vector<1x256xf32>
    %345 = vector.broadcast %344 : vector<1x256xf32> to vector<8x256xf32>
    %346 = arith.mulf %337, %345 : vector<8x256xf32>
    %c48_160 = arith.constant 48 : index
    %c0_161 = arith.constant 0 : index
    %347 = vector.load %arg13[%c48_160, %c0_161] : memref<144x256xf32, #tpu.memory_space<vmem>>, vector<8x256xf32>
    tpu.vector_store %arg13[%c48_160, %c0_161], %346 {strides = array<i32>} : memref<144x256xf32, #tpu.memory_space<vmem>>, vector<8x256xf32>,
    %c240_i32_162 = arith.constant 240 : i32
    %348 = tpu.dynamic_rotate %289 by %c240_i32_162 dim 1 : vector<8x256xf32>, i32 -> vector<8x256xf32>
    %c15_i32_163 = arith.constant 15 : i32
    %349 = vector.broadcast %c15_i32_163 : i32 to vector<1x256xi32>
    %350 = arith.cmpi slt, %3, %349 : vector<1x256xi32>
    %351 = arith.extui %350 : vector<1x256xi1> to vector<1x256xi32>
    %352 = arith.sitofp %351 : vector<1x256xi32> to vector<1x256xf32>
    %353 = vector.broadcast %352 : vector<1x256xf32> to vector<8x256xf32>
    %354 = arith.mulf %348, %353 : vector<8x256xf32>
    %c56 = arith.constant 56 : index
    %c0_164 = arith.constant 0 : index
    %355 = vector.load %arg13[%c56, %c0_164] : memref<144x256xf32, #tpu.memory_space<vmem>>, vector<8x256xf32>
    tpu.vector_store %arg13[%c56, %c0_164], %354 {strides = array<i32>} : memref<144x256xf32, #tpu.memory_space<vmem>>, vector<8x256xf32>,
    %c239_i32_165 = arith.constant 239 : i32
    %356 = tpu.dynamic_rotate %289 by %c239_i32_165 dim 1 : vector<8x256xf32>, i32 -> vector<8x256xf32>
    %c15_i32_166 = arith.constant 15 : i32
    %357 = vector.broadcast %c15_i32_166 : i32 to vector<1x256xi32>
    %358 = arith.cmpi slt, %3, %357 : vector<1x256xi32>
    %c15_i32_167 = arith.constant 15 : i32
    %359 = vector.broadcast %c15_i32_167 : i32 to vector<1x256xi32>
    %360 = arith.cmpi slt, %4, %359 : vector<1x256xi32>
    %361 = arith.andi %358, %360 : vector<1x256xi1>
    %362 = arith.extui %361 : vector<1x256xi1> to vector<1x256xi32>
    %363 = arith.sitofp %362 : vector<1x256xi32> to vector<1x256xf32>
    %364 = vector.broadcast %363 : vector<1x256xf32> to vector<8x256xf32>
    %365 = arith.mulf %356, %364 : vector<8x256xf32>
    %c64_168 = arith.constant 64 : index
    %c0_169 = arith.constant 0 : index
    %366 = vector.load %arg13[%c64_168, %c0_169] : memref<144x256xf32, #tpu.memory_space<vmem>>, vector<8x256xf32>
    tpu.vector_store %arg13[%c64_168, %c0_169], %365 {strides = array<i32>} : memref<144x256xf32, #tpu.memory_space<vmem>>, vector<8x256xf32>,
    %c0_170 = arith.constant 0 : index
    %c0_171 = arith.constant 0 : index
    %367 = vector.load %arg10[%c0_170, %c0_171] : memref<8x72xbf16, #tpu.memory_space<vmem>>, vector<8x72xbf16>
    %c0_172 = arith.constant 0 : index
    %c0_173 = arith.constant 0 : index
    %368 = vector.load %arg13[%c0_172, %c0_173] : memref<144x256xf32, #tpu.memory_space<vmem>>, vector<72x256xf32>
    %369 = arith.truncf %368 : vector<72x256xf32> to vector<72x256xbf16>
    %cst_174 = arith.constant dense<0.000000e+00> : vector<8x256xf32>
    %370 = tpu.matmul %367, %369, %cst_174 {dimension_numbers = #tpu.dot_dimension_numbers<[1], [0], [0], [1], [0, 0, 1, 1], [], []>} : vector<8x72xbf16>, vector<72x256xbf16>, vector<8x256xf32> -> vector<8x256xf32>
    %c0_175 = arith.constant 0 : index
    %c0_176 = arith.constant 0 : index
    %371 = vector.load %arg11[%c0_175, %c0_176] : memref<8x1xf32, #tpu.memory_space<vmem>>, vector<8x1xf32>
    %372 = vector.broadcast %371 : vector<8x1xf32> to vector<8x256xf32>
    %373 = arith.addf %370, %372 : vector<8x256xf32>
    %cst_177 = arith.constant 0.000000e+00 : f32
    %374 = vector.broadcast %cst_177 : f32 to vector<8x256xf32>
    %375 = arith.maximumf %373, %374 : vector<8x256xf32>
    %c0_178 = arith.constant 0 : index
    %c0_179 = arith.constant 0 : index
    %c0_180 = arith.constant 0 : index
    %376 = vector.load %arg12[%c0_178, %c0_179, %c0_180] : memref<1x8x256xf32, #tpu.memory_space<vmem>>, vector<1x8x256xf32>
    %377 = vector.shape_cast %376 : vector<1x8x256xf32> to vector<8x256xf32>
    %378 = vector.shape_cast %375 : vector<8x256xf32> to vector<1x8x256xf32>
    tpu.vector_store %arg12[%c0_178, %c0_179, %c0_180], %378 {strides = array<i32>} : memref<1x8x256xf32, #tpu.memory_space<vmem>>, vector<1x8x256xf32>,
    return
  }
  func.func @transform_0(%arg0: i32) -> (i32, i32, i32) {
    %c0_i32 = arith.constant 0 : i32
    %c0_i32_0 = arith.constant 0 : i32
    %c0_i32_1 = arith.constant 0 : i32
    return %arg0, %c0_i32, %c0_i32_0 : i32, i32, i32
  }
  func.func @transform_1(%arg0: i32) -> (i32, i32) {
    %c0_i32 = arith.constant 0 : i32
    %c0_i32_0 = arith.constant 0 : i32
    %c0_i32_1 = arith.constant 0 : i32
    return %c0_i32, %c0_i32_0 : i32, i32
  }
  func.func @transform_2(%arg0: i32) -> (i32, i32) {
    %c0_i32 = arith.constant 0 : i32
    %c0_i32_0 = arith.constant 0 : i32
    %c0_i32_1 = arith.constant 0 : i32
    return %c0_i32, %c0_i32_0 : i32, i32
  }
  func.func @transform_3(%arg0: i32) -> (i32, i32) {
    %c0_i32 = arith.constant 0 : i32
    %c0_i32_0 = arith.constant 0 : i32
    %c0_i32_1 = arith.constant 0 : i32
    return %c0_i32, %c0_i32_0 : i32, i32
  }
  func.func @transform_4(%arg0: i32) -> (i32, i32) {
    %c0_i32 = arith.constant 0 : i32
    %c0_i32_0 = arith.constant 0 : i32
    %c0_i32_1 = arith.constant 0 : i32
    return %c0_i32, %c0_i32_0 : i32, i32
  }
  func.func @transform_5(%arg0: i32) -> (i32, i32, i32) {
    %c0_i32 = arith.constant 0 : i32
    %c0_i32_0 = arith.constant 0 : i32
    %c0_i32_1 = arith.constant 0 : i32
    %c0_i32_2 = arith.constant 0 : i32
    return %c0_i32, %c0_i32_0, %c0_i32_1 : i32, i32, i32
  }
  func.func @transform_6(%arg0: i32) -> (i32, i32, i32) {
    %c0_i32 = arith.constant 0 : i32
    %c0_i32_0 = arith.constant 0 : i32
    %c0_i32_1 = arith.constant 0 : i32
    %c0_i32_2 = arith.constant 0 : i32
    return %c0_i32, %c0_i32_0, %c0_i32_1 : i32, i32, i32
  }
  func.func @transform_7(%arg0: i32) -> (i32, i32) {
    %c0_i32 = arith.constant 0 : i32
    %c0_i32_0 = arith.constant 0 : i32
    %c0_i32_1 = arith.constant 0 : i32
    return %c0_i32, %c0_i32_0 : i32, i32
  }
  func.func @transform_8(%arg0: i32) -> (i32, i32, i32) {
    %c0_i32 = arith.constant 0 : i32
    %c0_i32_0 = arith.constant 0 : i32
    %c0_i32_1 = arith.constant 0 : i32
    return %arg0, %c0_i32, %c0_i32_0 : i32, i32, i32
  }
  func.func @transform_9(%arg0: i32) -> (i32, i32) {
    %c0_i32 = arith.constant 0 : i32
    %c0_i32_0 = arith.constant 0 : i32
    %c0_i32_1 = arith.constant 0 : i32
    return %c0_i32, %c0_i32_0 : i32, i32
  }
  func.func @transform_10(%arg0: i32) -> (i32, i32) {
    %c0_i32 = arith.constant 0 : i32
    %c0_i32_0 = arith.constant 0 : i32
    %c0_i32_1 = arith.constant 0 : i32
    return %c0_i32, %c0_i32_0 : i32, i32
  }
  func.func @transform_11(%arg0: i32) -> (i32, i32, i32) {
    %c0_i32 = arith.constant 0 : i32
    %c0_i32_0 = arith.constant 0 : i32
    %c0_i32_1 = arith.constant 0 : i32
    return %arg0, %c0_i32, %c0_i32_0 : i32, i32, i32
  }
}

</mosaic_0001>

<bundles_post_ra>
// kernel: tpu_custom_call.1
= control target key start
LH: loop header
LB: loop body
LE: loop exit
PB: predicated region body
PF: predicated region fallthrough
CT: control target
= control target key end

     0   :  { %16 = vsyncpa [#allocation5], 0  ;;  %s3594_s0 = inlined_call_operand.vmem [shape: bf16[2,16,256], index: 0, kind: input, shape index: {}]   ;;  %s3595_s1 = inlined_call_operand.vmem [shape: s32[1,256], index: 1, kind: input, shape index: {}]   ;;  %s3596_s2 = inlined_call_operand.hbm [shape: s32[1,256], index: 2, kind: input, shape index: {}]   ;;  %s3597_s3 = inlined_call_operand.vmem [shape: bf16[8,16], index: 3, kind: input, shape index: {}]   ;;  %s3598_s4 = inlined_call_operand.vmem [shape: f32[8,1], index: 4, kind: input, shape index: {}]   ;;  %s3599_s5 = inlined_call_operand.vmem [shape: bf16[3,8,144], index: 5, kind: input, shape index: {}]   ;;  %s3600_s6 = inlined_call_operand.vmem [shape: f32[3,8,1], index: 6, kind: input, shape index: {}]   ;;  %s3601_s7 = inlined_call_operand.vmem [shape: bf16[8,32], index: 7, kind: input, shape index: {}]   ;;  %s3602_s8 = inlined_call_operand.vmem [shape: f32[2,8,1], index: 8, kind: input, shape index: {}]   ;;  %s3603_s9 = inlined_call_operand.vmem [shape: bf16[8,72], index: 9, kind: input, shape index: {}]   ;;  %s3604_s10 = inlined_call_operand.vmem [shape: f32[8,1], index: 10, kind: input, shape index: {}]   ;;  %s3605_s11 = inlined_call_operand.hbm [shape: f32[2,8,256], index: 11, kind: output, shape index: {}]  }
   0x1   :  { %17 = vsyncpa [#allocation6], 0 }
   0x2   :  { %19 = vsyncpa [#allocation6 + $0x1], 0  ;;  %s2603_s17 = smov 0   ;;  %s2605_s18 = smov 0  }
   0x3   :  { %s2607_s19 = smov 0   ;;  %s2609_s20 = smov 0  }
   0x4 LB: > { %s2624_s21 = sadd.s32 4294967295, %s2513_s20   ;;  %s2030_s22 = sadd.s32 4294967294, %s2513_s20   ;;  %s2513_s20 = sphi %s2609_s20, %s3699_s20   ;;  %s2509_s19 = sphi %s2607_s19, %s3698_s19   ;;  %s2505_s18 = sphi %s2605_s18, %s3697_s18   ;;  %s2501_s17 = sphi %s2603_s17, %s3696_s17  }
   0x5   : > { %s2628_s23 = sadd.s32 1, %s2513_s20   ;;  %s273_s24 = sadd.s32 1, %s2509_s19 }
   0x6   : > { %s270_s25 = ssub.s32 %s2513_s20, %s2628_s23  ;;  %p283_p0 = scmp.ne.s32.totalorder %s2509_s19, %s2505_s18 }
   0x7   : > { %p271_p1 = scmp.eq.s32.totalorder %s270_s25, 0  ;;  %p284_p2 = scmp.eq.s32.totalorder %s2624_s21, 1 }
   0x8   : > { %p289_p3 = scmp.ne.s32.totalorder %s2505_s18, %s2501_s17  ;;  %p290_p4 = scmp.eq.s32.totalorder %s2030_s22, 1 }
   0x9   : > { %s2639_s26 = scalar_select %p271_p1, %s2509_s19, %s273_s24  }
   0xa   : > { %p2641_p5 = por %p284_p2, %p283_p0  ;;  %p2645_p6 = por %p290_p4, %p289_p3 }
   0xb   : > { %3639 = sst [smem:[#allocation10_spill]] %s2639_s26  ;;  %p2031_p7 = scmp.ge.s32.totalorder %s2513_s20, 1 }
   0xc   : > { %s3640_s27 = scalar_select %p2641_p5, 1, 0 }
   0xd   : > { %s3641_s28 = scalar_select %p2645_p6, 1, 0 }
   0xe   : > { %p297_p8 = scmp.lt.s32.totalorder %s2513_s20, 3  ;;  %p3606_p9 = scmp.eq.s32.totalorder %s2624_s21, 0 }
   0xf   : > { %s2515_s30 = smov [#allocation4]   ;;  %s2419_s16 = scalar_lea.hbm %s3596_s2, 32 }
  0x10   : > { %p2652_p10 = pnand %p2031_p7, %p297_p8  ;;  %s313_s12 = sshll.u32 %s2515_s30, 4  ;;  %s314_s12 = int_to_ptr.vmem [resolvable:$true] %s313_s12 }
  0x11   : > { %p2420_p13 = scmp.ne.s32.totalorder %s3596_s2, %s2419_s16  ;;  %p2426_p3 = scmp.lt.u32.totalorder %s2419_s16, %s3596_s2 }
  0x12   : > { %s3642_s29 = scalar_select %p2652_p10, 1, 0 }
  0x13   : > { %p2098_p11 = pneg %p2652_p10 }
  0x15   : > { %p2660_p12 = pnand %p3606_p9, %p2098_p11 }
  0x17   : > { %p2421_p0 = pneg %p2660_p12 }
  0x19   : > { %p2422_p1 = pnand %p2421_p0, %p2420_p13 }
  0x1b   : > { %p2423_p2 = pneg %p2422_p1 }
  0x1d   : > { %p2428_p4 = pnand %p2426_p3, %p2423_p2 }
  0x1f   : > { %2431 = shalt.err (!%p2428_p4)
}
  0x20   : > { %s2432_s26 = scalar_lea.vmem %s314_s12, 32  ;;  %p2440_p9 = scmp.lt.s32.totalorder %s314_s12, %s314_s12 }
  0x21   : > { %p2433_p7 = scmp.ne.s32.totalorder %s314_s12, %s2432_s26  ;;  %p2441_p6 = scmp.lt.s32.totalorder %s2432_s26, %s2432_s26 }
  0x23   : > { %p2435_p8 = pnand %p2433_p7, %p2421_p0  ;;  %p2442_p5 = por %p2441_p6, %p2440_p9 }
  0x25   : > { %p2436_p11 = pneg %p2435_p8 }
  0x27   : > { %p2443_p10 = pnand %p2442_p5, %p2436_p11 }
  0x29   : > { %2446 = shalt.err (!%p2443_p10)
}
  0x2a   : > { %2101 = dma.hbm_to_vmem [thread:$0]  (!%p2660_p12), %s3596_s2, 32, %s314_s12, [#allocation5]  }
  0x2b   : > { %p3644_p13 = scmp.ne.s32.totalorder %s3642_s29, 0 }
  0x2d   : > { %362 = sbr.rel (%p3644_p13) target bundleno = 1112 (0x458), region = 64 }
  0x34   : > { %p3645_p1 = scmp.eq.s32.totalorder %s2624_s21, 0 }
  0x36   : > { %2492 = dma.done.wait (%p3645_p1), [#allocation5], 32   ;;  %p3646_p0 = pmov %p3645_p1 }
  0x37   : > { %p406_p6 = scmp.lt.s32.totalorder %s2624_s21, 1  ;;  %s3621_s29 = smov 16   ;;  %v3623_v10 = vmov 0   ;;  %v424_v11 = vld [vmem:[%s3597_s3] sm:$0xf]  ;;  %vm441_vm0 = vcmask 130048   ;;  %v498_v19 = vlaneseq }
  0x38   : > { %2494 = vsyncadd (%p3646_p0), [#allocation5], 4294967264  ;;  %s2517_s24 = smov 17   ;;  %s3619_s25 = smov 15   ;;  %477 = vmatprep.mubr.bf16.mxu0 %v3623_v10  ;;  %2409 = vset.pattern.permute.xlu1 %v3623_v10  ;;  %v2748_v12 = vld [vmem:[%s3599_s5] sm:$0xff]  ;;  %v2062_v14 = vld [vmem:[%s3599_s5 + $0x8] sm:$0xff] }
  0x39   : > { %s2688_s26 = scalar_select %p406_p6, %s2624_s21, 1  ;;  %2408 = vset.pattern.permute.xlu0 %v3623_v10  ;;  %v2052_v13 = vcombine.high %v2748_v12, %v2748_v12  ;;  %v2065_v15 = vcombine.high %v2062_v14, %v2062_v14  ;;  %v831_v16 = vld [vmem:[%s3600_s6] sm:$0xff]  ;;  %v2063_v21 = vld [vmem:[%s3600_s6 + $0x8] sm:$0xff]  ;;  %v2076_v22 = vld [vmem:[%s3600_s6 + $0x10] sm:$0xff]  ;;  %v512_v23 = vshrl.u32 %v498_v19, 7  ;;  %v2824_v27 = vand.u32 127, %v498_v19 }
  0x3a   : > { %s3617_s30 = smov 1   ;;  %s3613_s14 = smov 127   ;;  %v425_v17 = vld [vmem:[%s3598_s4] sm:$0xff]  ;;  %v3625_v28 = vmov 0.0  }
  0x3b   : > { %s2088_s13 = sshll.u32 %s2688_s26, 4  ;;  %s3611_s15 = smov 113   ;;  %2053 = vmatprep.mubr.msk.bf16.mxu1 %vm441_vm0, %v2052_v13  ;;  %v2797_v18 = vld [vmem:[%s3595_s1] sm:$0x3]  ;;  %v2818_v25 = vsub.s32 1, %v512_v23  ;;  %v2820_v26 = vsub.s32 0, %v512_v23 }
  0x3c   : > { %s410_s12 = scalar_lea.vmem %s3594_s0, %s2088_s13  ;;  %s3609_s13 = smov 112   ;;  %v2799_v20 = vld [vmem:[#allocation4] sm:$0x3]  ;;  %vm505_vm1 = vcmp.ge.s32.totalorder %v2797_v18, 1  ;;  %vm684_vm5 = vcmp.lt.s32.totalorder %v2797_v18, 15  ;;  %vm904_vm6 = vcmp.ge.s32.totalorder %v2797_v18, 2 }
  0x3d   : > { %v416_v0 = vld [vmem:[%s410_s12] sm:$0xff]  ;;  %v417_v1 = vld [vmem:[%s410_s12 + $0x8] sm:$0xff]  ;;  %s3615_s16 = smov 111   ;;  %s2527_s22 = smov 32   ;;  %vm506_vm2 = vcmp.ge.s32.totalorder %v2799_v20, 1  ;;  %vm576_vm4 = vcmp.lt.s32.totalorder %v2799_v20, 15 }
  0x3e   : > { %v418_v2 = vunpack.c.l.bf16 %v416_v0  ;;  %v420_v3 = vunpack.c.l.bf16 %v417_v1  ;;  %v419_v4 = vunpack.c.h.bf16 %v416_v0  ;;  %v421_v5 = vunpack.c.h.bf16 %v417_v1  ;;  %s2532_s12 = smov 3   ;;  %vm507_vm3 = vmand %vm505_vm1, %vm506_vm2  ;;  %p3693_p9 = scmp.ne.s32.totalorder %s3640_s27, 0 }
  0x3f   : > { %v2718_v8 = vcombine.high %v416_v0, %v417_v1  ;;  %v2720_v9 = vcombine.low %v416_v0, %v417_v1  ;;  %vm905_vm7 = vcmp.ge.s32.totalorder %v2799_v20, 2  ;;  %v2043_v29 = vsel %vm507_vm3, 1.0, %v3625_v28  ;;  %vm577_vm8 = vmand %vm505_vm1, %vm576_vm4 }
  0x40   : > { %v2694_v6 = vpack.i.bf16 %v420_v3, %v418_v2  ;;  %v2700_v7 = vpack.i.bf16 %v421_v5, %v419_v4  ;;  %v2044_v30 = vsel %vm505_vm1, 1.0, %v3625_v28  ;;  %v2046_v31 = vsel %vm506_vm2, 1.0, %v3625_v28  ;;  %vm685_vm9 = vmand %vm684_vm5, %vm506_vm2 }
  0x41   : > { %445 = vmatprep.subr.bf16.mxu0 %v2718_v8  ;;  %vm1305_vm10 = vcmp.ge.s32.totalorder %v2797_v18, 3  ;;  %vm1306_vm11 = vcmp.ge.s32.totalorder %v2799_v20, 3  ;;  %v2047_v32 = vsel %vm576_vm4, 1.0, %v3625_v28  ;;  %vm2850_vm12 = vmand %vm904_vm6, %vm905_vm7  ;;  %vm975_vm13 = vcmp.lt.s32.totalorder %v2799_v20, 14 }
  0x42   : > { %2179 = vrot.lane.b32.xlu1 %v2694_v6, %s3621_s29  ;;  %2169 = vrot.lane.b32.xlu0 %v2694_v6, %s2517_s24  ;;  %v2856_v34 = vrot.slane %v2043_v29, %v2818_v25  ;;  %v2859_v35 = vrot.slane %v2043_v29, %v2820_v26  ;;  %v2045_v36 = vsel %vm577_vm8, 1.0, %v3625_v28  ;;  %vm2866_vm14 = vmand %vm684_vm5, %vm576_vm4  ;;  %vm1376_vm15 = vcmp.lt.s32.totalorder %v2799_v20, 13 }
  0x43   : > { %446 = vmatpush1.bf16.msra.mxu0 %v2720_v9  ;;  %vm537_vm1 = vcmp.lt.s32.totalorder %v2824_v27, 16  ;;  %v2873_v38 = vrot.slane %v2044_v30, %v2818_v25  ;;  %v2876_v39 = vrot.slane %v2044_v30, %v2820_v26  ;;  %v2879_v40 = vrot.slane %v2046_v31, %v2818_v25  ;;  %vm1307_vm2 = vmand %vm1305_vm10, %vm1306_vm11 }
  0x44   : > { %v2048_v41 = vsel %vm685_vm9, 1.0, %v3625_v28  ;;  %vm500_vm3 = vcmp.lt.s32.totalorder %v2824_v27, 17  ;;  %v2888_v42 = vrot.slane %v2046_v31, %v2820_v26  ;;  %v2891_v43 = vrot.slane %v2047_v32, %v2818_v25  ;;  %vm2903_vm4 = vmand %vm904_vm6, %vm975_vm13 }
  0x45   : > { %3651 = vst [vmem:[#allocation11_spill] sm:$0xff] %v2879_v40  ;;  %v2894_v44 = vrot.slane %v2047_v32, %v2820_v26  ;;  %v2049_v45 = vsel %vm684_vm5, 1.0, %v3625_v28  ;;  %v2908_v47 = vrot.slane %v2045_v36, %v2818_v25  ;;  %v2911_v48 = vrot.slane %v2045_v36, %v2820_v26  ;;  %vm1377_vm5 = vmand %vm1305_vm10, %vm1376_vm15 }
  0x46   : > { %2184 = vrot.lane.b32.xlu1 %v2700_v7, %s3621_s29  ;;  %2174 = vrot.lane.b32.xlu0 %v2700_v7, %s2517_s24  ;;  %3652 = vst [vmem:[#allocation12_spill] sm:$0xff] %v2888_v42  ;;  %3653 = vst [vmem:[#allocation13_spill] sm:$0xff] %v2891_v43  ;;  %v2054_v49 = vsel %vm2850_vm12, 1.0, %v3625_v28  ;;  %v2050_v50 = vsel %vm2866_vm14, 1.0, %v3625_v28  ;;  %v2924_v51 = vrot.slane %v2048_v41, %v2818_v25  ;;  %v2067_v52 = vsel %vm1307_vm2, 1.0, %v3625_v28  ;;  %s3676_s29 = smov 112  }
  0x47   : > { %2042 = vmatmul.mubr.msk.bf16.vlgmr.msra.gmra.mrb[0].mxu0 %vm441_vm0, %v424_v11  ;;  %3654 = vst [vmem:[#allocation14_spill] sm:$0xff] %v2894_v44  ;;  %3657 = vst [vmem:[#allocation15_spill] sm:$0xff] %v2908_v47  ;;  %v2928_v53 = vrot.slane %v2048_v41, %v2820_v26  ;;  %v2055_v54 = vsel %vm904_vm6, 1.0, %v3625_v28  ;;  %vm571_vm8 = vcmp.lt.s32.totalorder %v2824_v27, 15  ;;  %v2935_v57 = vrot.slane %v2049_v45, %v2818_v25 }
  0x48   : > { %2066 = vmatprep.mubr.msk.bf16.mxu0 %vm441_vm0, %v2065_v15  ;;  %3658 = vst [vmem:[#allocation16_spill] sm:$0xff] %v2911_v48  ;;  %3659 = vst [vmem:[#allocation17_spill] sm:$0xff] %v2924_v51  ;;  %v2938_v58 = vrot.slane %v2049_v45, %v2820_v26  ;;  %v2068_v59 = vsel %vm1305_vm10, 1.0, %v3625_v28  ;;  %v2946_v60 = vsel %vm2903_vm4, 1.0, %v3625_v28  ;;  %v2949_v61 = vrot.slane %v2054_v49, %v2820_v26 }
  0x49   : > { %3660 = vst [vmem:[#allocation18_spill] sm:$0xff] %v2928_v53  ;;  %3661 = vst [vmem:[#allocation19_spill] sm:$0xff] %v2935_v57  ;;  %v2952_v62 = vrot.slane %v2050_v50, %v2818_v25  ;;  %v2955_v63 = vrot.slane %v2050_v50, %v2820_v26  ;;  %v2958_v0 = vsel %vm1377_vm5, 1.0, %v3625_v28  ;;  %v2961_v1 = vrot.slane %v2067_v52, %v2820_v26 }
  0x4a   : > { %2194 = vrot.lane.b32.xlu1 %v2700_v7, %s3619_s25  ;;  %2189 = vrot.lane.b32.xlu0 %v2694_v6, %s3619_s25  ;;  %v2964_v2 = vrot.slane %v2055_v54, %v2820_v26  ;;  %v2967_v3 = vrot.slane %v2054_v49, %v2818_v25  ;;  %v2970_v4 = vrot.slane %v2067_v52, %v2818_v25  ;;  %vm607_vm6 = vcmp.lt.s32.totalorder %v2824_v27, 1  ;;  %s3677_s25 = smov 111  }
  0x4b   : > { %v2973_v5 = vrot.slane %v2068_v59, %v2820_v26  ;;  %v2982_v11 = vrot.slane %v2055_v54, %v2818_v25  ;;  %v2990_v19 = vrot.slane %v2068_v59, %v2818_v25  ;;  %v2995_v31 = vsel %vm905_vm7, 1.0, %v3625_v28 }
  0x4c   : > { %v3000_v32 = vsel %vm1306_vm11, 1.0, %v3625_v28  ;;  %vm645_vm9 = vcmp.lt.s32.totalorder %v2824_v27, 127  ;;  %vm3638_vm10 = vcmp.lt.s32.totalorder %v2824_v27, 113  ;;  %vm3637_vm12 = vcmp.lt.s32.totalorder %v2824_v27, 112 }
  0x4d   : > { %vm3636_vm14 = vcmp.lt.s32.totalorder %v2824_v27, 111  ;;  %vm899_vm2 = vcmp.lt.s32.totalorder %v2824_v27, 34  ;;  %vm1300_vm4 = vcmp.lt.s32.totalorder %v2824_v27, 51  ;;  %vm936_vm5 = vcmp.lt.s32.totalorder %v2824_v27, 32 }
  0x4e   : > { %2204 = vrot.lane.b32.xlu1 %v2700_v7, %s3617_s30  ;;  %2199 = vrot.lane.b32.xlu0 %v2694_v6, %s3617_s30 }
  0x52   : > { %2214 = vrot.lane.b32.xlu1 %v2700_v7, %s3613_s14  ;;  %2209 = vrot.lane.b32.xlu0 %v2694_v6, %s3613_s14  ;;  %s2529_s14 = smov 30  }
  0x56   : > { %2224 = vrot.lane.b32.xlu1 %v2700_v7, %s3611_s15  ;;  %2219 = vrot.lane.b32.xlu0 %v2694_v6, %s3611_s15  ;;  %s2530_s15 = smov 45  }
  0x5a   : > { %2234 = vrot.lane.b32.xlu1 %v2700_v7, %s3609_s13  ;;  %2229 = vrot.lane.b32.xlu0 %v2694_v6, %s3609_s13  ;;  %s2525_s13 = smov 34  }
  0x5e   : > { %2244 = vrot.lane.b32.xlu1 %v2700_v7, %s3615_s16  ;;  %2239 = vrot.lane.b32.xlu0 %v2694_v6, %s3615_s16  ;;  %s2526_s16 = smov 51  }
  0x62   : > { %2254 = vrot.lane.b32.xlu1 %v2700_v7, %s2525_s13  ;;  %2249 = vrot.lane.b32.xlu0 %v2694_v6, %s2525_s13  ;;  %s2528_s13 = smov 48  }
  0x66   : > { %2264 = vrot.lane.b32.xlu1 %v2700_v7, %s2526_s16  ;;  %2259 = vrot.lane.b32.xlu0 %v2694_v6, %s2526_s16  ;;  %s2531_s16 = smov 2  }
  0x6a   : > { %2274 = vrot.lane.b32.xlu1 %v2700_v7, %s2527_s22  ;;  %2269 = vrot.lane.b32.xlu0 %v2694_v6, %s2527_s22  ;;  %s2533_s22 = smov 126  }
  0x6e   : > { %2284 = vrot.lane.b32.xlu1 %v2700_v7, %s2528_s13  ;;  %2279 = vrot.lane.b32.xlu0 %v2694_v6, %s2528_s13  ;;  %s2534_s13 = smov 125  }
  0x72   : > { %2294 = vrot.lane.b32.xlu1 %v2700_v7, %s2529_s14  ;;  %2289 = vrot.lane.b32.xlu0 %v2694_v6, %s2529_s14  ;;  %s2535_s14 = smov 98  }
  0x76   : > { %2304 = vrot.lane.b32.xlu1 %v2700_v7, %s2530_s15  ;;  %2299 = vrot.lane.b32.xlu0 %v2694_v6, %s2530_s15  ;;  %s2536_s15 = smov 83  }
  0x7a   : > { %2314 = vrot.lane.b32.xlu1 %v2700_v7, %s2531_s16  ;;  %2309 = vrot.lane.b32.xlu0 %v2694_v6, %s2531_s16  ;;  %s2537_s16 = smov 96  }
  0x7e   : > { %2324 = vrot.lane.b32.xlu1 %v2700_v7, %s2532_s12  ;;  %2319 = vrot.lane.b32.xlu0 %v2694_v6, %s2532_s12  ;;  %s2538_s12 = smov 80  }
  0x82   : > { %2334 = vrot.lane.b32.xlu1 %v2700_v7, %s2533_s22  ;;  %2329 = vrot.lane.b32.xlu0 %v2694_v6, %s2533_s22 }
  0x86   : > { %2344 = vrot.lane.b32.xlu1 %v2700_v7, %s2534_s13  ;;  %2339 = vrot.lane.b32.xlu0 %v2694_v6, %s2534_s13  ;;  %s2039_s13 = sshll.u32 %s2688_s26, 3  ;;  %s3673_s26 = smov 1  }
  0x87   : > { %s414_s22 = scalar_lea.vmem %s3602_s8, %s2039_s13 }
  0x88   : > { %v1706_v24 = vld [vmem:[%s414_s22] sm:$0xff]  ;;  %s3674_s22 = smov 127  }
  0x8a   : > { %2354 = vrot.lane.b32.xlu1 %v2700_v7, %s2535_s14  ;;  %2349 = vrot.lane.b32.xlu0 %v2694_v6, %s2535_s14  ;;  %s2539_s14 = smov 94  }
  0x8e   : > { %2364 = vrot.lane.b32.xlu1 %v2700_v7, %s2536_s15  ;;  %2359 = vrot.lane.b32.xlu0 %v2694_v6, %s2536_s15  ;;  %s2540_s15 = smov 77  }
  0x92   : > { %2374 = vrot.lane.b32.xlu1 %v2700_v7, %s2537_s16  ;;  %2369 = vrot.lane.b32.xlu0 %v2694_v6, %s2537_s16  ;;  %s3671_s16 = smov 16  }
  0x96   : > { %2384 = vrot.lane.b32.xlu1 %v2700_v7, %s2538_s12  ;;  %2379 = vrot.lane.b32.xlu0 %v2694_v6, %s2538_s12  ;;  %s3672_s12 = smov 15  }
  0x9a   : > { %2394 = vrot.lane.b32.xlu1 %v2700_v7, %s2539_s14  ;;  %2389 = vrot.lane.b32.xlu0 %v2694_v6, %s2539_s14 }
  0x9e   : > { %2404 = vrot.lane.b32.xlu1 %v2700_v7, %s2540_s15  ;;  %2399 = vrot.lane.b32.xlu0 %v2694_v6, %s2540_s15  ;;  %v2979_v7 = vrot.slane %v2946_v60, %v2820_v26  ;;  %s2542_s15 = smov [#allocation7]  }
  0x9f   : > { %s2451_s30 = sshll.u32 %s2542_s15, 4  ;;  %s2452_s30 = int_to_ptr.vmem [resolvable:$false] %s2451_s30 }
  0xa2   : > { %834 = vperm.xlu1 %2409, %v831_v16   ;;  %428 = vperm.xlu0 %2408, %v425_v17   ;;  %v2987_v17 = vrot.slane %v2958_v0, %v2820_v26 }
  0xa6   : > { %1235 = vperm.xlu1 %2409, %v2063_v21   ;;  %1636 = vperm.xlu0 %2408, %v2076_v22  }
  0xaa   : > { %1709 = vperm.xlu1 %2409, %v1706_v24  }
  0xb4   : > { %v2180_v55 = vpop.permute.xlu1 %2179  ;;  %v2170_v56 = vpop.permute.xlu0 %2169 }
  0xb5   : > { %v2182_v13 = vunpack.i.h.bf16 %v2180_v55  ;;  %v2181_v14 = vunpack.i.l.bf16 %v2180_v55  ;;  %v2172_v29 = vunpack.i.h.bf16 %v2170_v56  ;;  %v2171_v30 = vunpack.i.l.bf16 %v2170_v56 }
  0xb8   : > { %v2185_v15 = vpop.permute.xlu1 %2184  ;;  %v2175_v16 = vpop.permute.xlu0 %2174 }
  0xb9   : > { %v2187_v21 = vunpack.i.h.bf16 %v2185_v15  ;;  %v2186_v22 = vunpack.i.l.bf16 %v2185_v15  ;;  %v2177_v23 = vunpack.i.h.bf16 %v2175_v16  ;;  %v2176_v24 = vunpack.i.l.bf16 %v2175_v16 }
  0xbb   : > { %v538_v33 = vsel %vm537_vm1, %v2181_v14, %v2186_v22  ;;  %v539_v36 = vsel %vm537_vm1, %v2182_v13, %v2187_v21  ;;  %v540_v37 = vsel %vm537_vm1, %v2186_v22, %v2181_v14  ;;  %v541_v41 = vsel %vm537_vm1, %v2187_v21, %v2182_v13 }
  0xbc   : > { %v2195_v45 = vpop.permute.xlu1 %2194  ;;  %v2190_v46 = vpop.permute.xlu0 %2189  ;;  %v501_v49 = vsel %vm500_vm3, %v2171_v30, %v2176_v24  ;;  %v502_v50 = vsel %vm500_vm3, %v2172_v29, %v2177_v23  ;;  %v503_v52 = vsel %vm500_vm3, %v2176_v24, %v2171_v30  ;;  %v504_v54 = vsel %vm500_vm3, %v2177_v23, %v2172_v29 }
  0xbd   : > { %v2197_v55 = vunpack.i.h.bf16 %v2195_v45  ;;  %v2196_v56 = vunpack.i.l.bf16 %v2195_v45  ;;  %v2192_v59 = vunpack.i.h.bf16 %v2190_v46  ;;  %v2191_v14 = vunpack.i.l.bf16 %v2190_v46 }
  0xbe   : > { %v522_v13 = vmul.f32 %v2856_v34, %v501_v49  ;;  %v524_v15 = vmul.f32 %v2856_v34, %v502_v50  ;;  %v521_v16 = vmul.f32 %v2859_v35, %v503_v52  ;;  %v523_v21 = vmul.f32 %v2859_v35, %v504_v54 }
  0xbf   : > { %v573_v22 = vsel %vm571_vm8, %v2192_v59, %v2197_v55  ;;  %v575_v23 = vsel %vm571_vm8, %v2197_v55, %v2192_v59  ;;  %v572_v24 = vsel %vm571_vm8, %v2191_v14, %v2196_v56  ;;  %v574_v29 = vsel %vm571_vm8, %v2196_v56, %v2191_v14 }
  0xc0   : > { %v2205_v30 = vpop.permute.xlu1 %2204  ;;  %v2200_v45 = vpop.permute.xlu0 %2199  ;;  %v814_v46 = vpack.c.bf16 %v524_v15, %v522_v13  ;;  %v813_v49 = vpack.c.bf16 %v523_v21, %v521_v16  ;;  %v556_v50 = vmul.f32 %v2873_v38, %v538_v33  ;;  %v558_v52 = vmul.f32 %v2873_v38, %v539_v36 }
  0xc1   : > { %v2207_v54 = vunpack.i.h.bf16 %v2205_v30  ;;  %v2206_v10 = vunpack.i.l.bf16 %v2205_v30  ;;  %v2202_v6 = vunpack.i.h.bf16 %v2200_v45  ;;  %v2201_v55 = vunpack.i.l.bf16 %v2200_v45 }
  0xc2   : > { %846 = vmatprep.subr.bf16.mxu1 %v814_v46  ;;  %v816_v59 = vpack.c.bf16 %v558_v52, %v556_v50  ;;  %v555_v28 = vmul.f32 %v2876_v39, %v540_v37  ;;  %v557_v56 = vmul.f32 %v2876_v39, %v541_v41  ;;  %v592_v14 = vmul.f32 %v2908_v47, %v572_v24 }
  0xc3   : > { %v609_v13 = vsel %vm607_vm6, %v2202_v6, %v2207_v54  ;;  %v611_v33 = vsel %vm607_vm6, %v2207_v54, %v2202_v6  ;;  %v608_v36 = vsel %vm607_vm6, %v2201_v55, %v2206_v10  ;;  %v610_v15 = vsel %vm607_vm6, %v2206_v10, %v2201_v55  ;;  %847 = vmatpush1.bf16.msra.mxu1 %v813_v49 }
  0xc4   : > { %848 = vmatprep.subr.bf16.mxu1 %v816_v59  ;;  %v2215_v16 = vpop.permute.xlu1 %2214  ;;  %v2210_v37 = vpop.permute.xlu0 %2209  ;;  %v815_v21 = vpack.c.bf16 %v557_v56, %v555_v28  ;;  %v594_v41 = vmul.f32 %v2908_v47, %v573_v22  ;;  %v591_v24 = vmul.f32 %v2911_v48, %v574_v29  ;;  %v593_v30 = vmul.f32 %v2911_v48, %v575_v23 }
  0xc5   : > { %v2217_v6 = vunpack.i.h.bf16 %v2215_v16  ;;  %v2216_v45 = vunpack.i.l.bf16 %v2215_v16  ;;  %v2212_v46 = vunpack.i.h.bf16 %v2210_v37  ;;  %v2211_v50 = vunpack.i.l.bf16 %v2210_v37 }
  0xc6   : > { %v818_v52 = vpack.c.bf16 %v594_v41, %v592_v14  ;;  %v626_v10 = vmul.f32 %v2879_v40, %v608_v36  ;;  %v628_v49 = vmul.f32 %v2879_v40, %v609_v13  ;;  %v3053_v28 = vrot.slane %v2946_v60, %v2818_v25 }
  0xc7   : > { %849 = vmatpush1.bf16.msra.mxu1 %v815_v21  ;;  %v817_v22 = vpack.c.bf16 %v593_v30, %v591_v24  ;;  %v3057_v23 = vrot.slane %v2995_v31, %v2820_v26  ;;  %v3061_v29 = vrot.slane %v3000_v32, %v2820_v26  ;;  %v3065_v54 = vrot.slane %v2958_v0, %v2818_v25 }
  0xc8   : > { %v649_v55 = vsel %vm645_vm9, %v2217_v6, %v2212_v46  ;;  %v648_v60 = vsel %vm645_vm9, %v2216_v45, %v2211_v50  ;;  %850 = vmatprep.subr.bf16.mxu1 %v818_v52  ;;  %v2225_v59 = vpop.permute.xlu1 %2224  ;;  %v2220_v56 = vpop.permute.xlu0 %2219  ;;  %v625_v14 = vmul.f32 %v2888_v42, %v610_v15  ;;  %v627_v13 = vmul.f32 %v2888_v42, %v611_v33 }
  0xc9   : > { %v2227_v36 = vunpack.i.h.bf16 %v2225_v59  ;;  %v2226_v16 = vunpack.i.l.bf16 %v2225_v59  ;;  %v2222_v37 = vunpack.i.h.bf16 %v2220_v56  ;;  %v2221_v0 = vunpack.i.l.bf16 %v2220_v56 }
  0xca   : > { %v647_v21 = vsel %vm645_vm9, %v2212_v46, %v2217_v6  ;;  %v820_v41 = vpack.c.bf16 %v628_v49, %v626_v10  ;;  %v3662_v24 = vmov 0.0   ;;  %v3083_v15 = vrot.slane %v2995_v31, %v2818_v25 }
  0xcb   : > { %v3079_v30 = vsel %vm975_vm13, 1.0, %v3662_v24  ;;  %v646_v33 = vsel %vm645_vm9, %v2211_v50, %v2216_v45  ;;  %v683_v52 = vsel %vm3638_vm10, %v2227_v36, %v2222_v37  ;;  %v682_v59 = vsel %vm3638_vm10, %v2226_v16, %v2221_v0  ;;  %851 = vmatpush1.bf16.msra.mxu1 %v817_v22 }
  0xcc   : > { %v664_v6 = vmul.f32 %v2891_v43, %v648_v60  ;;  %v681_v46 = vsel %vm3638_vm10, %v2222_v37, %v2227_v36  ;;  %v680_v10 = vsel %vm3638_vm10, %v2221_v0, %v2226_v16  ;;  %852 = vmatprep.subr.bf16.mxu1 %v820_v41  ;;  %v2235_v31 = vpop.permute.xlu1 %2234  ;;  %v2230_v49 = vpop.permute.xlu0 %2229  ;;  %v819_v56 = vpack.c.bf16 %v627_v13, %v625_v14 }
  0xcd   : > { %v666_v45 = vmul.f32 %v2891_v43, %v649_v55  ;;  %v2237_v50 = vunpack.i.h.bf16 %v2235_v31  ;;  %v2236_v40 = vunpack.i.l.bf16 %v2235_v31  ;;  %v2232_v42 = vunpack.i.h.bf16 %v2230_v49 }
  0xce   : > { %v2231_v22 = vunpack.i.l.bf16 %v2230_v49  ;;  %v663_v60 = vmul.f32 %v2894_v44, %v646_v33  ;;  %v665_v47 = vmul.f32 %v2894_v44, %v647_v21  ;;  %v700_v36 = vmul.f32 %v2924_v51, %v682_v59 }
  0xcf   : > { %v702_v16 = vmul.f32 %v2924_v51, %v683_v52  ;;  %v719_v37 = vsel %vm3637_vm12, %v2237_v50, %v2232_v42  ;;  %853 = vmatpush1.bf16.msra.mxu1 %v819_v56  ;;  %v3107_v14 = vmul.f32 %v2928_v53, %v680_v10  ;;  %v3110_v13 = vmul.f32 %v2928_v53, %v681_v46 }
  0xd0   : > { %v718_v55 = vsel %vm3637_vm12, %v2236_v40, %v2231_v22  ;;  %v717_v0 = vsel %vm3637_vm12, %v2232_v42, %v2237_v50  ;;  %v716_v21 = vsel %vm3637_vm12, %v2231_v22, %v2236_v40  ;;  %v2245_v41 = vpop.permute.xlu1 %2244  ;;  %v2240_v33 = vpop.permute.xlu0 %2239  ;;  %854 = vmatprep.subr.bf16.mxu1 %v2718_v8  ;;  %v736_v59 = vmul.f32 %v2935_v57, %v719_v37 }
  0xd1   : > { %v734_v52 = vmul.f32 %v2935_v57, %v718_v55  ;;  %v2247_v10 = vunpack.i.h.bf16 %v2245_v41  ;;  %v2246_v31 = vunpack.i.l.bf16 %v2245_v41  ;;  %v2242_v46 = vunpack.i.h.bf16 %v2240_v33 }
  0xd2   : > { %v2241_v49 = vunpack.i.l.bf16 %v2240_v33  ;;  %v824_v56 = vpack.c.bf16 %v666_v45, %v664_v6  ;;  %v3122_v42 = vrot.slane %v3079_v30, %v2820_v26  ;;  %v3127_v40 = vsel %vm1376_vm15, 1.0, %v3662_v24 }
  0xd3   : > { %v3131_v50 = vrot.slane %v3000_v32, %v2818_v25  ;;  %v753_v22 = vsel %vm3636_vm14, %v2247_v10, %v2242_v46  ;;  %855 = vmatpush1.bf16.msra.mxu1 %v2720_v9  ;;  %v823_v6 = vpack.c.bf16 %v665_v47, %v663_v60  ;;  %v826_v45 = vpack.c.bf16 %v702_v16, %v700_v36 }
  0xd4   : > { %v752_v37 = vsel %vm3636_vm14, %v2246_v31, %v2241_v49  ;;  %856 = vmatprep.subr.bf16.mxu1 %v824_v56  ;;  %v2255_v55 = vpop.permute.xlu1 %2254  ;;  %v2250_v41 = vpop.permute.xlu0 %2249  ;;  %v825_v33 = vpack.c.bf16 %v3110_v13, %v3107_v14  ;;  %v828_v57 = vpack.c.bf16 %v736_v59, %v734_v52  ;;  %v733_v32 = vmul.f32 %v2938_v58, %v716_v21 }
  0xd5   : > { %v735_v51 = vmul.f32 %v2938_v58, %v717_v0  ;;  %v2257_v53 = vunpack.i.h.bf16 %v2255_v55  ;;  %v2256_v43 = vunpack.i.l.bf16 %v2255_v55  ;;  %v2252_v44 = vunpack.i.h.bf16 %v2250_v41 }
  0xd6   : > { %v2251_v48 = vunpack.i.l.bf16 %v2250_v41  ;;  %v751_v47 = vsel %vm3636_vm14, %v2242_v46, %v2247_v10  ;;  %v750_v60 = vsel %vm3636_vm14, %v2241_v49, %v2246_v31  ;;  %v769_v36 = vmul.f32 %v2952_v62, %v752_v37 }
  0xd7   : > { %v771_v16 = vmul.f32 %v2952_v62, %v753_v22  ;;  %v901_v14 = vsel %vm899_vm2, %v2252_v44, %v2257_v53  ;;  %v903_v13 = vsel %vm899_vm2, %v2257_v53, %v2252_v44  ;;  %857 = vmatpush1.bf16.msra.mxu1 %v823_v6  ;;  %vm1337_vm14 = vcmp.lt.s32.totalorder %v2824_v27, 48  ;;  %v3165_v44 = vld [vmem:[%s3599_s5 + $0x10] sm:$0xff] }
  0xd8   : > { %v900_v0 = vsel %vm899_vm2, %v2251_v48, %v2256_v43  ;;  %v902_v21 = vsel %vm899_vm2, %v2256_v43, %v2251_v48  ;;  %v922_v52 = vmul.f32 %v2949_v61, %v903_v13  ;;  %858 = vmatprep.subr.bf16.mxu1 %v826_v45  ;;  %v2265_v10 = vpop.permute.xlu1 %2264  ;;  %v2260_v31 = vpop.permute.xlu0 %2259  ;;  %v923_v49 = vmul.f32 %v2967_v3, %v901_v14 }
  0xd9   : > { %v920_v59 = vmul.f32 %v2949_v61, %v902_v21  ;;  %v921_v46 = vmul.f32 %v2967_v3, %v900_v0  ;;  %v2267_v43 = vunpack.i.h.bf16 %v2265_v10  ;;  %v2266_v48 = vunpack.i.l.bf16 %v2265_v10 }
  0xda   : > { %v2262_v53 = vunpack.i.h.bf16 %v2260_v31  ;;  %v2261_v56 = vunpack.i.l.bf16 %v2260_v31  ;;  %v768_v37 = vmul.f32 %v2955_v63, %v750_v60  ;;  %v770_v6 = vmul.f32 %v2955_v63, %v751_v47 }
  0xdb   : > { %v1214_v22 = vpack.c.bf16 %v923_v49, %v921_v46  ;;  %v1213_v61 = vpack.c.bf16 %v922_v52, %v920_v59  ;;  %859 = vmatpush1.bf16.msra.mxu1 %v825_v33  ;;  %v3175_v55 = vrot.slane %v3127_v40, %v2820_v26  ;;  %v2078_v41 = vcombine.high %v3165_v44, %v3165_v44 }
  0xdc   : > { %v1302_v3 = vsel %vm1300_vm4, %v2262_v53, %v2267_v43  ;;  %v1301_v45 = vsel %vm1300_vm4, %v2261_v56, %v2266_v48  ;;  %v1304_v14 = vsel %vm1300_vm4, %v2267_v43, %v2262_v53  ;;  %860 = vmatprep.subr.bf16.mxu1 %v828_v57  ;;  %v2275_v60 = vpop.permute.xlu1 %2274  ;;  %v2270_v47 = vpop.permute.xlu0 %2269  ;;  %v827_v13 = vpack.c.bf16 %v735_v51, %v733_v32 }
  0xdd   : > { %1247 = vmatprep.subr.bf16.mxu0 %v1214_v22  ;;  %v830_v0 = vpack.c.bf16 %v771_v16, %v769_v36  ;;  %vm970_vm2 = vcmp.lt.s32.totalorder %v2824_v27, 30  ;;  %vm1083_vm12 = vcmp.lt.s32.totalorder %v2797_v18, 14  ;;  %v2277_v33 = vunpack.i.h.bf16 %v2275_v60 }
  0xde   : > { %v2276_v21 = vunpack.i.l.bf16 %v2275_v60  ;;  %v2272_v52 = vunpack.i.h.bf16 %v2270_v47  ;;  %v2271_v59 = vunpack.i.l.bf16 %v2270_v47  ;;  %1248 = vmatpush1.bf16.msra.mxu0 %v1213_v61  ;;  %v1303_v10 = vsel %vm1300_vm4, %v2266_v48, %v2261_v56  ;;  %vm3231_vm10 = vmand %vm1083_vm12, %vm905_vm7 }
  0xdf   : > { %v829_v31 = vpack.c.bf16 %v770_v6, %v768_v37  ;;  %v1322_v57 = vmul.f32 %v2970_v4, %v1301_v45  ;;  %v1324_v46 = vmul.f32 %v2970_v4, %v1302_v3  ;;  %861 = vmatpush1.bf16.msra.mxu1 %v827_v13  ;;  %v1323_v49 = vmul.f32 %v2961_v1, %v1304_v14 }
  0xe0   : > { %v938_v51 = vsel %vm936_vm5, %v2272_v52, %v2277_v33  ;;  %v940_v32 = vsel %vm936_vm5, %v2277_v33, %v2272_v52  ;;  %v937_v36 = vsel %vm936_vm5, %v2271_v59, %v2276_v21  ;;  %v939_v16 = vsel %vm936_vm5, %v2276_v21, %v2271_v59  ;;  %862 = vmatprep.subr.bf16.mxu1 %v830_v0  ;;  %v2285_v4 = vpop.permute.xlu1 %2284  ;;  %v2280_v53 = vpop.permute.xlu0 %2279 }
  0xe1   : > { %v956_v43 = vmul.f32 %v2964_v2, %v940_v32  ;;  %v954_v48 = vmul.f32 %v2964_v2, %v939_v16  ;;  %v955_v56 = vmul.f32 %v2982_v11, %v937_v36  ;;  %vm1371_vm4 = vcmp.lt.s32.totalorder %v2824_v27, 45 }
  0xe2   : > { %v2287_v22 = vunpack.i.h.bf16 %v2285_v4  ;;  %v2286_v61 = vunpack.i.l.bf16 %v2285_v4  ;;  %v2282_v37 = vunpack.i.h.bf16 %v2280_v53  ;;  %v2281_v6 = vunpack.i.l.bf16 %v2280_v53 }
  0xe3   : > { %v1321_v3 = vmul.f32 %v2961_v1, %v1303_v10  ;;  %v1615_v45 = vpack.c.bf16 %v1324_v46, %v1322_v57  ;;  %v957_v14 = vmul.f32 %v2982_v11, %v938_v51  ;;  %v1215_v60 = vpack.c.bf16 %v956_v43, %v954_v48  ;;  %863 = vmatpush1.bf16.msra.mxu1 %v829_v31 }
  0xe4   : > { %v1339_v2 = vsel %vm1337_vm14, %v2282_v37, %v2287_v22  ;;  %v1341_v47 = vsel %vm1337_vm14, %v2287_v22, %v2282_v37  ;;  %v1338_v13 = vsel %vm1337_vm14, %v2281_v6, %v2286_v61  ;;  %v1340_v0 = vsel %vm1337_vm14, %v2286_v61, %v2281_v6  ;;  %v2295_v11 = vpop.permute.xlu1 %2294  ;;  %v2290_v21 = vpop.permute.xlu0 %2289 }
  0xe5   : > { %v1357_v33 = vmul.f32 %v2973_v5, %v1341_v47  ;;  %v1355_v1 = vmul.f32 %v2973_v5, %v1340_v0  ;;  %1648 = vmatprep.subr.bf16.mxu1 %v1615_v45  ;;  %v1216_v52 = vpack.c.bf16 %v957_v14, %v955_v56  ;;  %v1356_v59 = vmul.f32 %v2990_v19, %v1338_v13 }
  0xe6   : > { %vm1006_vm5 = vcmp.lt.s32.totalorder %v2824_v27, 2  ;;  %v2297_v10 = vunpack.i.h.bf16 %v2295_v11  ;;  %v2296_v57 = vunpack.i.l.bf16 %v2295_v11  ;;  %v2292_v46 = vunpack.i.h.bf16 %v2290_v21 }
  0xe7   : > { %v2291_v51 = vunpack.i.l.bf16 %v2290_v21  ;;  %1249 = vmatprep.subr.bf16.mxu0 %v1216_v52  ;;  %v3663_v31 = vcombine.low %v2748_v12, %v2748_v12  ;;  %v1614_v32 = vpack.c.bf16 %v1323_v49, %v1321_v3  ;;  %v1358_v5 = vmul.f32 %v2990_v19, %v1339_v2 }
  0xe8   : > { %v1616_v36 = vpack.c.bf16 %v1357_v33, %v1355_v1  ;;  %vm1484_vm14 = vcmp.lt.s32.totalorder %v2797_v18, 13  ;;  %v972_v16 = vsel %vm970_vm2, %v2292_v46, %v2297_v10  ;;  %v974_v43 = vsel %vm970_vm2, %v2297_v10, %v2292_v46  ;;  %1250 = vmatpush1.bf16.msra.mxu0 %v1215_v60  ;;  %v2305_v53 = vpop.permute.xlu1 %2304  ;;  %v2300_v56 = vpop.permute.xlu0 %2299 }
  0xe9   : > { %879 = vmatmul.mubr.bf16.vlgmr.msra.gmra.mrb[0].mxu1 %v3663_v31  ;;  %v971_v48 = vsel %vm970_vm2, %v2291_v51, %v2296_v57  ;;  %v973_v4 = vsel %vm970_vm2, %v2296_v57, %v2291_v51  ;;  %v992_v19 = vmul.f32 %v2979_v7, %v974_v43  ;;  %v1617_v22 = vpack.c.bf16 %v1358_v5, %v1356_v59 }
  0xea   : > { %v990_v49 = vmul.f32 %v2979_v7, %v973_v4  ;;  %1649 = vmatpush1.bf16.msra.mxu1 %v1614_v32  ;;  %v991_v61 = vmul.f32 %v3053_v28, %v971_v48  ;;  %vm1407_vm2 = vcmp.lt.s32.totalorder %v2824_v27, 3  ;;  %v2307_v37 = vunpack.i.h.bf16 %v2305_v53  ;;  %2079 = vmatprep.mubr.msk.bf16.mxu1 %vm441_vm0, %v2078_v41  ;;  %vm3265_vm0 = vmand %vm1484_vm14, %vm1306_vm11 }
  0xeb   : > { %v2306_v6 = vunpack.i.l.bf16 %v2305_v53  ;;  %v2302_v3 = vunpack.i.h.bf16 %v2300_v56  ;;  %v2301_v45 = vunpack.i.l.bf16 %v2300_v56  ;;  %1650 = vmatprep.subr.bf16.mxu1 %v1617_v22  ;;  %v993_v7 = vmul.f32 %v3053_v28, %v972_v16 }
  0xec   : > { %v1217_v14 = vpack.c.bf16 %v992_v19, %v990_v49  ;;  %v3247_v60 = vsel %vm3231_vm10, 1.0, %v3662_v24  ;;  %v3251_v2 = vrot.slane %v3079_v30, %v2818_v25  ;;  %v2315_v1 = vpop.permute.xlu1 %2314  ;;  %v2310_v11 = vpop.permute.xlu0 %2309  ;;  %vm1044_vm7 = vcmp.lt.s32.totalorder %v2824_v27, 126 }
  0xed   : > { %v1373_v47 = vsel %vm1371_vm4, %v2302_v3, %v2307_v37  ;;  %v1375_v13 = vsel %vm1371_vm4, %v2307_v37, %v2302_v3  ;;  %v1372_v41 = vsel %vm1371_vm4, %v2301_v45, %v2306_v6  ;;  %v1374_v28 = vsel %vm1371_vm4, %v2306_v6, %v2301_v45 }
  0xee   : > { %v1393_v30 = vmul.f32 %v2987_v17, %v1375_v13  ;;  %v1391_v33 = vmul.f32 %v2987_v17, %v1374_v28  ;;  %1651 = vmatpush1.bf16.msra.mxu1 %v1616_v36  ;;  %v1218_v21 = vpack.c.bf16 %v993_v7, %v991_v61  ;;  %v1392_v52 = vmul.f32 %v3065_v54, %v1372_v41 }
  0xef   : > { %v2317_v59 = vunpack.i.h.bf16 %v2315_v1  ;;  %v2316_v10 = vunpack.i.l.bf16 %v2315_v1  ;;  %v2312_v57 = vunpack.i.h.bf16 %v2310_v11  ;;  %v2311_v46 = vunpack.i.l.bf16 %v2310_v11 }
  0xf0   : > { %1251 = vmatprep.subr.bf16.mxu0 %v1218_v21  ;;  %v1394_v51 = vmul.f32 %v3065_v54, %v1373_v47  ;;  %v1618_v31 = vpack.c.bf16 %v1393_v30, %v1391_v33  ;;  %v3276_v32 = vrot.slane %v3247_v60, %v2820_v26  ;;  %v3281_v17 = vsel %vm3265_vm0, 1.0, %v3662_v24  ;;  %v2325_v4 = vpop.permute.xlu1 %2324  ;;  %v2320_v12 = vpop.permute.xlu0 %2319 }
  0xf1   : > { %v1008_v5 = vsel %vm1006_vm5, %v2312_v57, %v2317_v59  ;;  %v1010_v36 = vsel %vm1006_vm5, %v2317_v59, %v2312_v57  ;;  %v1007_v16 = vsel %vm1006_vm5, %v2311_v46, %v2316_v10  ;;  %v1009_v54 = vsel %vm1006_vm5, %v2316_v10, %v2311_v46  ;;  %1252 = vmatpush1.bf16.msra.mxu0 %v1217_v14 }
  0xf2   : > { %v1026_v43 = vmul.f32 %v3057_v23, %v1010_v36  ;;  %v1024_v48 = vmul.f32 %v3057_v23, %v1009_v54  ;;  %v1619_v19 = vpack.c.bf16 %v1394_v51, %v1392_v52  ;;  %v1025_v49 = vmul.f32 %v3083_v15, %v1007_v16 }
  0xf3   : > { %vm1445_vm11 = vcmp.lt.s32.totalorder %v2824_v27, 125  ;;  %v2327_v53 = vunpack.i.h.bf16 %v2325_v4  ;;  %v2326_v56 = vunpack.i.l.bf16 %v2325_v4  ;;  %v2322_v22 = vunpack.i.h.bf16 %v2320_v12 }
  0xf4   : > { %v2321_v61 = vunpack.i.l.bf16 %v2320_v12  ;;  %1652 = vmatprep.subr.bf16.mxu1 %v1619_v19  ;;  %v1027_v37 = vmul.f32 %v3083_v15, %v1008_v5  ;;  %v1219_v6 = vpack.c.bf16 %v1026_v43, %v1024_v48  ;;  %v3298_v3 = vrot.slane %v3281_v17, %v2820_v26  ;;  %v2335_v41 = vpop.permute.xlu1 %2334 }
  0xf5   : > { %v3302_v23 = vrot.slane %v3127_v40, %v2818_v25  ;;  %v1409_v45 = vsel %vm1407_vm2, %v2322_v22, %v2327_v53  ;;  %v1411_v7 = vsel %vm1407_vm2, %v2327_v53, %v2322_v22  ;;  %1653 = vmatpush1.bf16.msra.mxu1 %v1618_v31  ;;  %v2330_v40 = vpop.permute.xlu0 %2329  ;;  %vm1078_vm10 = vcmp.lt.s32.totalorder %v2824_v27, 98 }
  0xf6   : > { %v1408_v14 = vsel %vm1407_vm2, %v2321_v61, %v2326_v56  ;;  %v1410_v15 = vsel %vm1407_vm2, %v2326_v56, %v2321_v61  ;;  %v1427_v47 = vmul.f32 %v3061_v29, %v1411_v7  ;;  %v1220_v28 = vpack.c.bf16 %v1027_v37, %v1025_v49  ;;  %vm3382_vm2 = vmand %vm1083_vm12, %vm975_vm13 }
  0xf7   : > { %v1425_v13 = vmul.f32 %v3061_v29, %v1410_v15  ;;  %v1426_v0 = vmul.f32 %v3131_v50, %v1408_v14  ;;  %v2337_v30 = vunpack.i.h.bf16 %v2335_v41  ;;  %v2336_v33 = vunpack.i.l.bf16 %v2335_v41 }
  0xf8   : > { %v2332_v1 = vunpack.i.h.bf16 %v2330_v40  ;;  %v2331_v11 = vunpack.i.l.bf16 %v2330_v40  ;;  %1253 = vmatprep.subr.bf16.mxu0 %v1220_v28  ;;  %v1428_v21 = vmul.f32 %v3131_v50, %v1409_v45  ;;  %v3320_v59 = vsel %vm1083_vm12, 1.0, %v3662_v24  ;;  %v2345_v5 = vpop.permute.xlu1 %2344  ;;  %vm1554_vm12 = vmand %vm1484_vm14, %vm1376_vm15 }
  0xf9   : > { %v1620_v52 = vpack.c.bf16 %v1427_v47, %v1425_v13  ;;  %v3324_v29 = vrot.slane %v3247_v60, %v2818_v25  ;;  %1254 = vmatpush1.bf16.msra.mxu0 %v1219_v6  ;;  %v2340_v60 = vpop.permute.xlu0 %2339  ;;  %vm1479_vm4 = vcmp.lt.s32.totalorder %v2824_v27, 83  ;;  %v2347_v54 = vunpack.i.h.bf16 %v2345_v5 }
  0xfa   : > { %v1046_v10 = vsel %vm1044_vm7, %v2332_v1, %v2337_v30  ;;  %v1048_v57 = vsel %vm1044_vm7, %v2337_v30, %v2332_v1  ;;  %v1045_v46 = vsel %vm1044_vm7, %v2331_v11, %v2336_v33  ;;  %v1047_v50 = vsel %vm1044_vm7, %v2336_v33, %v2331_v11  ;;  %1255 = vmatprep.subr.bf16.mxu0 %v2718_v8 }
  0xfb   : > { %v1064_v51 = vmul.f32 %v3122_v42, %v1046_v10  ;;  %v1062_v31 = vmul.f32 %v3122_v42, %v1045_v46  ;;  %v1621_v36 = vpack.c.bf16 %v1428_v21, %v1426_v0  ;;  %v1063_v16 = vmul.f32 %v3251_v2, %v1047_v50 }
  0xfc   : > { %v2346_v43 = vunpack.i.l.bf16 %v2345_v5  ;;  %v2342_v48 = vunpack.i.h.bf16 %v2340_v60  ;;  %v2341_v4 = vunpack.i.l.bf16 %v2340_v60  ;;  %v1065_v12 = vmul.f32 %v3251_v2, %v1048_v57  ;;  %v2355_v6 = vpop.permute.xlu1 %2354 }
  0xfd   : > { %1654 = vmatprep.subr.bf16.mxu1 %v1621_v36  ;;  %v1223_v19 = vpack.c.bf16 %v1064_v51, %v1062_v31  ;;  %v3342_v42 = vrot.slane %v3320_v59, %v2820_v26  ;;  %v3347_v49 = vsel %vm1484_vm14, 1.0, %v3662_v24  ;;  %1256 = vmatpush1.bf16.msra.mxu0 %v2720_v9  ;;  %v2350_v45 = vpop.permute.xlu0 %2349  ;;  %vm1114_vm5 = vcmp.lt.s32.totalorder %v2824_v27, 96 }
  0xfe   : > { %v1447_v53 = vsel %vm1445_vm11, %v2342_v48, %v2347_v54  ;;  %v1449_v56 = vsel %vm1445_vm11, %v2347_v54, %v2342_v48  ;;  %v1446_v22 = vsel %vm1445_vm11, %v2341_v4, %v2346_v43  ;;  %v1448_v2 = vsel %vm1445_vm11, %v2346_v43, %v2341_v4  ;;  %1655 = vmatpush1.bf16.msra.mxu1 %v1620_v52 }
  0xff   : > { %v1465_v61 = vmul.f32 %v3175_v55, %v1447_v53  ;;  %v1463_v37 = vmul.f32 %v3175_v55, %v1446_v22  ;;  %v1224_v7 = vpack.c.bf16 %v1065_v12, %v1063_v16  ;;  %v1464_v14 = vmul.f32 %v3302_v23, %v1448_v2  ;;  %1656 = vmatprep.subr.bf16.mxu1 %v2718_v8 }
 0x100   : > { %v2357_v15 = vunpack.i.h.bf16 %v2355_v6  ;;  %v2356_v47 = vunpack.i.l.bf16 %v2355_v6  ;;  %v2352_v13 = vunpack.i.h.bf16 %v2350_v45  ;;  %v2351_v41 = vunpack.i.l.bf16 %v2350_v45  ;;  %v2365_v21 = vpop.permute.xlu1 %2364 }
 0x101   : > { %1257 = vmatprep.subr.bf16.mxu0 %v1224_v7  ;;  %v1466_v40 = vmul.f32 %v3302_v23, %v1449_v56  ;;  %v1624_v28 = vpack.c.bf16 %v1465_v61, %v1463_v37  ;;  %v3366_v55 = vrot.slane %v3347_v49, %v2820_v26  ;;  %v1496_v0 = vrot.slane %v3281_v17, %v2818_v25  ;;  %v2360_v52 = vpop.permute.xlu0 %2359 }
 0x102   : > { %v1080_v30 = vsel %vm1078_vm10, %v2352_v13, %v2357_v15  ;;  %v1082_v33 = vsel %vm1078_vm10, %v2357_v15, %v2352_v13  ;;  %v1079_v8 = vsel %vm1078_vm10, %v2351_v41, %v2356_v47  ;;  %v1081_v23 = vsel %vm1078_vm10, %v2356_v47, %v2351_v41  ;;  %1258 = vmatpush1.bf16.msra.mxu0 %v1223_v19 }
 0x103   : > { %v1100_v17 = vmul.f32 %v3276_v32, %v1080_v30  ;;  %v1098_v11 = vmul.f32 %v3276_v32, %v1079_v8  ;;  %1657 = vmatpush1.bf16.msra.mxu1 %v2720_v9  ;;  %v1625_v10 = vpack.c.bf16 %v1466_v40, %v1464_v14  ;;  %v1099_v57 = vmul.f32 %v3324_v29, %v1081_v23 }
 0x104   : > { %vm1515_vm0 = vcmp.lt.s32.totalorder %v2824_v27, 80  ;;  %v2367_v46 = vunpack.i.h.bf16 %v2365_v21  ;;  %v2366_v50 = vunpack.i.l.bf16 %v2365_v21  ;;  %v2362_v51 = vunpack.i.h.bf16 %v2360_v52  ;;  %v2375_v4 = vpop.permute.xlu1 %2374 }
 0x105   : > { %v2361_v31 = vunpack.i.l.bf16 %v2360_v52  ;;  %1658 = vmatprep.subr.bf16.mxu1 %v1625_v10  ;;  %v1101_v5 = vmul.f32 %v3324_v29, %v1082_v33  ;;  %v1225_v60 = vpack.c.bf16 %v1100_v17, %v1098_v11  ;;  %v2061_v32 = vsel %vm3382_vm2, 1.0, %v3662_v24  ;;  %v2370_v12 = vpop.permute.xlu0 %2369 }
 0x106   : > { %v1129_v9 = vrot.slane %v3320_v59, %v2818_v25  ;;  %v1481_v36 = vsel %vm1479_vm4, %v2362_v51, %v2367_v46  ;;  %v1483_v16 = vsel %vm1479_vm4, %v2367_v46, %v2362_v51  ;;  %vm1148_vm13 = vcmp.lt.s32.totalorder %v2824_v27, 94 }
 0x107   : > { %v1480_v54 = vsel %vm1479_vm4, %v2361_v31, %v2366_v50  ;;  %v1482_v29 = vsel %vm1479_vm4, %v2366_v50, %v2361_v31  ;;  %v1501_v43 = vmul.f32 %v3298_v3, %v1481_v36  ;;  %1659 = vmatpush1.bf16.msra.mxu1 %v1624_v28  ;;  %v1226_v59 = vpack.c.bf16 %v1101_v5, %v1099_v57 }
 0x108   : > { %v1499_v48 = vmul.f32 %v3298_v3, %v1480_v54  ;;  %v1500_v19 = vmul.f32 %v1496_v0, %v1482_v29  ;;  %v2377_v53 = vunpack.i.h.bf16 %v2375_v4  ;;  %v2376_v56 = vunpack.i.l.bf16 %v2375_v4  ;;  %v2385_v13 = vpop.permute.xlu1 %2384 }
 0x109   : > { %v2372_v22 = vunpack.i.h.bf16 %v2370_v12  ;;  %v2371_v2 = vunpack.i.l.bf16 %v2370_v12  ;;  %1259 = vmatprep.subr.bf16.mxu0 %v1226_v59  ;;  %v1502_v61 = vmul.f32 %v1496_v0, %v1483_v16  ;;  %v1160_v6 = vrot.slane %v2061_v32, %v2820_v26  ;;  %v2380_v41 = vpop.permute.xlu0 %2379 }
 0x10a   : > { %v1626_v37 = vpack.c.bf16 %v1501_v43, %v1499_v48  ;;  %v1530_v45 = vrot.slane %v3347_v49, %v2818_v25  ;;  %1260 = vmatpush1.bf16.msra.mxu0 %v1225_v60  ;;  %vm1549_vm7 = vcmp.lt.s32.totalorder %v2824_v27, 77  ;;  %v2387_v0 = vunpack.i.h.bf16 %v2385_v13 }
 0x10b   : > { %v1116_v3 = vsel %vm1114_vm5, %v2372_v22, %v2377_v53  ;;  %v1118_v7 = vsel %vm1114_vm5, %v2377_v53, %v2372_v22  ;;  %v1115_v14 = vsel %vm1114_vm5, %v2371_v2, %v2376_v56  ;;  %v1117_v15 = vsel %vm1114_vm5, %v2376_v56, %v2371_v2 }
 0x10c   : > { %v1134_v49 = vmul.f32 %v3342_v42, %v1116_v3  ;;  %v1132_v47 = vmul.f32 %v3342_v42, %v1115_v14  ;;  %v1627_v40 = vpack.c.bf16 %v1502_v61, %v1500_v19  ;;  %v1133_v28 = vmul.f32 %v1129_v9, %v1117_v15 }
 0x10d   : > { %v2386_v30 = vunpack.i.l.bf16 %v2385_v13  ;;  %v2382_v33 = vunpack.i.h.bf16 %v2380_v41  ;;  %v2381_v8 = vunpack.i.l.bf16 %v2380_v41  ;;  %v1135_v23 = vmul.f32 %v1129_v9, %v1118_v7  ;;  %v2390_v57 = vpop.permute.xlu0 %2389  ;;  %v2418_v13 = vld [vmem:[%s3599_s5 + $0x8] sm:$0xff] }
 0x10e   : > { %1660 = vmatprep.subr.bf16.mxu1 %v1627_v40  ;;  %v1227_v20 = vpack.c.bf16 %v1134_v49, %v1132_v47  ;;  %v2074_v18 = vsel %vm1554_vm12, 1.0, %v3662_v24  ;;  %v1164_v1 = vrot.slane %v2061_v32, %v2818_v25  ;;  %v2395_v24 = vpop.permute.xlu1 %2394  ;;  %v2392_v5 = vunpack.i.h.bf16 %v2390_v57 }
 0x10f   : > { %v1517_v42 = vsel %vm1515_vm0, %v2382_v33, %v2387_v0  ;;  %v1519_v17 = vsel %vm1515_vm0, %v2387_v0, %v2382_v33  ;;  %v1516_v11 = vsel %vm1515_vm0, %v2381_v8, %v2386_v30  ;;  %v1518_v21 = vsel %vm1515_vm0, %v2386_v30, %v2381_v8  ;;  %1661 = vmatpush1.bf16.msra.mxu1 %v1626_v37 }
 0x110   : > { %v1535_v52 = vmul.f32 %v3366_v55, %v1517_v42  ;;  %v1533_v10 = vmul.f32 %v3366_v55, %v1516_v11  ;;  %v1228_v46 = vpack.c.bf16 %v1135_v23, %v1133_v28  ;;  %v1534_v50 = vmul.f32 %v1530_v45, %v1518_v21 }
 0x111   : > { %v2397_v51 = vunpack.i.h.bf16 %v2395_v24  ;;  %v2396_v31 = vunpack.i.l.bf16 %v2395_v24  ;;  %v2391_v60 = vunpack.i.l.bf16 %v2390_v57  ;;  %v1561_v32 = vrot.slane %v2074_v18, %v2820_v26  ;;  %v2400_v12 = vpop.permute.xlu0 %2399 }
 0x112   : > { %1261 = vmatprep.subr.bf16.mxu0 %v1228_v46  ;;  %v1536_v9 = vmul.f32 %v1530_v45, %v1519_v17  ;;  %v1628_v36 = vpack.c.bf16 %v1535_v52, %v1533_v10  ;;  %v1565_v16 = vrot.slane %v2074_v18, %v2818_v25  ;;  %v2405_v26 = vpop.permute.xlu1 %2404  ;;  %v2402_v56 = vunpack.i.h.bf16 %v2400_v12 }
 0x113   : > { %v1150_v54 = vsel %vm1148_vm13, %v2392_v5, %v2397_v51  ;;  %v1152_v55 = vsel %vm1148_vm13, %v2397_v51, %v2392_v5  ;;  %v1149_v29 = vsel %vm1148_vm13, %v2391_v60, %v2396_v31  ;;  %v1151_v43 = vsel %vm1148_vm13, %v2396_v31, %v2391_v60  ;;  %1262 = vmatpush1.bf16.msra.mxu0 %v1227_v20 }
 0x114   : > { %v1169_v48 = vmul.f32 %v1160_v6, %v1150_v54  ;;  %v1167_v4 = vmul.f32 %v1160_v6, %v1149_v29  ;;  %v1629_v59 = vpack.c.bf16 %v1536_v9, %v1534_v50  ;;  %v1168_v19 = vmul.f32 %v1164_v1, %v1151_v43 }
 0x115   : > { %v2407_v25 = vunpack.i.h.bf16 %v2405_v26  ;;  %v2406_v53 = vunpack.i.l.bf16 %v2405_v26  ;;  %v2401_v22 = vunpack.i.l.bf16 %v2400_v12  ;;  %v1170_v2 = vmul.f32 %v1164_v1, %v1152_v55 }
 0x116   : > { %1662 = vmatprep.subr.bf16.mxu1 %v1629_v59  ;;  %v1229_v61 = vpack.c.bf16 %v1169_v48, %v1167_v4  ;;  %v2064_v41 = vcombine.low %v2418_v13, %v2418_v13  ;;  %v2077_v0 = vcombine.low %v3165_v44, %v3165_v44  ;;  %v3670_v30 = vmov 0   ;;  %v1870_v13 = vld [vmem:[%s3604_s10] sm:$0xff] }
 0x117   : > { %v1551_v37 = vsel %vm1549_vm7, %v2402_v56, %v2407_v25  ;;  %v1553_v45 = vsel %vm1549_vm7, %v2407_v25, %v2402_v56  ;;  %v1550_v6 = vsel %vm1549_vm7, %v2401_v22, %v2406_v53  ;;  %v1552_v3 = vsel %vm1549_vm7, %v2406_v53, %v2401_v22  ;;  %1663 = vmatpush1.bf16.msra.mxu1 %v1628_v36 }
 0x118   : > { %v1570_v7 = vmul.f32 %v1561_v32, %v1551_v37  ;;  %v1568_v14 = vmul.f32 %v1561_v32, %v1550_v6  ;;  %v1230_v15 = vpack.c.bf16 %v1170_v2, %v1168_v19  ;;  %v1569_v49 = vmul.f32 %v1565_v16, %v1552_v3 }
 0x119   : > { %v1571_v47 = vmul.f32 %v1565_v16, %v1553_v45  ;;  %vm1712_vm15 = vcmask 261120   ;;  %vm1880_vm11 = vcmask 1043456   ;;  %vm1876_vm10 = vcmask 588800  }
 0x11a   : > { %1263 = vmatprep.subr.bf16.mxu0 %v1230_v15  ;;  %v1630_v40 = vpack.c.bf16 %v1570_v7, %v1568_v14  ;;  %v479_v33 = vpop.f32.mrb[0].mxu0 }
 0x11b   : > { %1264 = vmatpush1.bf16.msra.mxu0 %v1229_v61  ;;  %v1631_v28 = vpack.c.bf16 %v1571_v47, %v1569_v49  ;;  %v481_v8 = vpop.f32.mrb[1].mxu0  ;;  %v1693_v61 = vld [vmem:[%s3601_s7] sm:$0xf] }
 0x11c   : > { %v483_v23 = vpop.f32.mrb[2].mxu0 }
 0x11d   : > { %1664 = vmatprep.subr.bf16.mxu1 %v1631_v28  ;;  %v484_v20 = vpop.f32.mrb[3].mxu0 }
 0x11e   : > { %1280 = vmatmul.mubr.bf16.vlgmr.msra.gmra.mrb[4].mxu0 %v2064_v41  ;;  %1665 = vmatpush1.bf16.msra.mxu1 %v1630_v40 }
 0x11f   : > { %1748 = vmatprep.mubr.bf16.mxu0 %v3670_v30 }
 0x121   : > { %1681 = vmatmul.mubr.bf16.vlgmr.msra.gmra.mrb[4].mxu1 %v2077_v0  ;;  %v429_v18 = vpop.permute.xlu0 %428  ;;  %v835_v42 = vpop.permute.xlu1 %834 }
 0x122   : > { %v480_v1 = vadd.f32 %v479_v33, %v429_v18  ;;  %v482_v17 = vadd.f32 %v481_v8, %v429_v18 }
 0x124   : > { %v486_v10 = vmax.f32 %v480_v1, 0.0  ;;  %v487_v57 = vmax.f32 %v482_v17, 0.0 }
 0x125   : > { %v1236_v32 = vpop.permute.xlu1 %1235  ;;  %v1637_v16 = vpop.permute.xlu0 %1636 }
 0x129   : > { %v1710_v37 = vpop.permute.xlu1 %1709 }
 0x1bc   : > { %v880_v11 = vpop.f32.mrb[0].mxu1 }
 0x1bd   : > { %v882_v21 = vpop.f32.mrb[1].mxu1  ;;  %v881_v52 = vadd.f32 %v880_v11, %v835_v42 }
 0x1be   : > { %v883_v24 = vadd.f32 %v882_v21, %v835_v42  ;;  %v884_v44 = vpop.f32.mrb[2].mxu1 }
 0x1bf   : > { %v887_v46 = vmax.f32 %v881_v52, 0.0  ;;  %v885_v50 = vpop.f32.mrb[3].mxu1 }
 0x1c0   : > { %v888_v51 = vmax.f32 %v883_v24, 0.0 }
 0x1c1   : > { %v1702_v31 = vpack.c.bf16 %v887_v46, %v486_v10  ;;  %v3679_v46 = vld [vmem:[#allocation15_spill] sm:$0xff] }
 0x1c2   : > { %v1703_v5 = vpack.c.bf16 %v888_v51, %v487_v57  ;;  %v3680_v51 = vld [vmem:[#allocation12_spill] sm:$0xff] }
 0x1c4   : > { %1716 = vmatprep.subr.bf16.mxu0 %v1703_v5  ;;  %v3681_v5 = vld [vmem:[#allocation11_spill] sm:$0xff] }
 0x1c5   : > { %1717 = vmatpush1.bf16.msra.mxu0 %v1702_v31 }
 0x1f1   : > { %v1281_v60 = vpop.f32.mrb[4].mxu0 }
 0x1f2   : > { %v1283_v9 = vpop.f32.mrb[5].mxu0  ;;  %v1282_v36 = vadd.f32 %v1281_v60, %v1236_v32 }
 0x1f3   : > { %v1285_v54 = vpop.f32.mrb[6].mxu0  ;;  %v1284_v55 = vadd.f32 %v1283_v9, %v1236_v32 }
 0x1f4   : > { %v1286_v29 = vpop.f32.mrb[7].mxu0  ;;  %v1682_v43 = vpop.f32.mrb[4].mxu1  ;;  %v1288_v59 = vmax.f32 %v1282_v36, 0.0 }
 0x1f5   : > { %v1683_v48 = vadd.f32 %v1682_v43, %v1637_v16  ;;  %v1684_v4 = vpop.f32.mrb[5].mxu1  ;;  %v1289_v53 = vmax.f32 %v1284_v55, 0.0  ;;  %v3682_v29 = vld [vmem:[#allocation14_spill] sm:$0xff] }
 0x1f6   : > { %v1685_v26 = vadd.f32 %v1684_v4, %v1637_v16  ;;  %v1686_v12 = vpop.f32.mrb[6].mxu1 }
 0x1f7   : > { %v1689_v19 = vmax.f32 %v1683_v48, 0.0  ;;  %v1687_v25 = vpop.f32.mrb[7].mxu1  ;;  %v3683_v48 = vld [vmem:[#allocation13_spill] sm:$0xff] }
 0x1f8   : > { %v1690_v56 = vmax.f32 %v1685_v26, 0.0 }
 0x1f9   : > { %v1704_v22 = vpack.c.bf16 %v1689_v19, %v1288_v59 }
 0x1fa   : > { %v1705_v2 = vpack.c.bf16 %v1690_v56, %v1289_v53 }
 0x1fc   : > { %1718 = vmatprep.subr.bf16.mxu0 %v1705_v2 }
 0x1fd   : > { %1719 = vmatpush1.bf16.msra.mxu0 %v1704_v22 }
 0x200   : > { %2080 = vmatmul.mubr.msk.bf16.vlgmr.msra.gmra.mrb[8].mxu0 %vm1712_vm15, %v1693_v61 }
 0x201   : > { %1919 = vmatprep.mubr.bf16.mxu0 %v3670_v30 }
 0x2d3   : > { %v1750_v45 = vpop.f32.mrb[8].mxu0 }
 0x2d4   : > { %v1751_v6 = vadd.f32 %v1750_v45, %v1710_v37  ;;  %v1752_v3 = vpop.f32.mrb[9].mxu0 }
 0x2d5   : > { %v1753_v7 = vadd.f32 %v1752_v3, %v1710_v37  ;;  %v1754_v14 = vpop.f32.mrb[10].mxu0  ;;  %v3688_v37 = vld [vmem:[#allocation18_spill] sm:$0xff] }
 0x2d6   : > { %v3466_v15 = vmax.f32 %v1751_v6, 0.0  ;;  %v1755_v49 = vpop.f32.mrb[11].mxu0  ;;  %v3689_v6 = vld [vmem:[#allocation17_spill] sm:$0xff]  ;;  %v3690_v14 = vld [vmem:[#allocation19_spill] sm:$0xff] }
 0x2d7   : > { %v1758_v47 = vmax.f32 %v1753_v7, 0.0 }
 0x2d8   : > { %1759 = vrot.lane.b32.xlu0 %v3466_v15, %s2517_s24 }
 0x2d9   : > { %1761 = vrot.lane.b32.xlu1 %v1758_v47, %s2517_s24  ;;  %s3675_s24 = smov 113  }
 0x2dc   : > { %1769 = vrot.lane.b32.xlu0 %v3466_v15, %s3671_s16 }
 0x2dd   : > { %1771 = vrot.lane.b32.xlu1 %v1758_v47, %s3671_s16  ;;  %s403_s16 = sand.u32 1, %s2505_s18  }
 0x2e0   : > { %1779 = vrot.lane.b32.xlu0 %v3466_v15, %s3672_s12 }
 0x2e1   : > { %1781 = vrot.lane.b32.xlu1 %v1758_v47, %s3672_s12  ;;  %s2036_s12 = sshll.u32 %s403_s16, 4 }
 0x2e4   : > { %1789 = vrot.lane.b32.xlu0 %v3466_v15, %s3673_s26 }
 0x2e5   : > { %1791 = vrot.lane.b32.xlu1 %v1758_v47, %s3673_s26  ;;  %s2089_s26 = sshll.u32 %s2624_s21, 8  ;;  %s1933_s21 = scalar_lea.sflag [#allocation6], %s403_s16 }
 0x2e6   : > { %s3552_s13 = scalar_lea.hbm %s3605_s11, %s2089_s26 }
 0x2e8   : > { %1801 = vrot.lane.b32.xlu0 %v3466_v15, %s3674_s22 }
 0x2e9   : > { %1803 = vrot.lane.b32.xlu1 %v1758_v47, %s3674_s22  ;;  %s405_s22 = scalar_lea.vmem [#allocation7], %s2036_s12  ;;  %s2453_s12 = scalar_lea.vmem %s2452_s30, 512 }
 0x2ec   : > { %1811 = vrot.lane.b32.xlu0 %v3466_v15, %s3675_s24 }
 0x2ed   : > { %1813 = vrot.lane.b32.xlu1 %v1758_v47, %s3675_s24  ;;  %s1947_s24 = sshll.u32 %s405_s22, 4  ;;  %s3554_s24 = int_to_ptr.vmem [resolvable:$true] %s1947_s24 }
 0x2ee   : > { %s2447_s14 = scalar_lea.vmem %s3554_s24, 256  ;;  %p2454_p2 = scmp.lt.s32.totalorder %s3554_s24, %s2452_s30 }
 0x2ef   : > { %p2448_p5 = scmp.ne.s32.totalorder %s3554_s24, %s2447_s14  ;;  %p2455_p3 = scmp.lt.s32.totalorder %s2453_s12, %s2447_s14 }
 0x2f0   : > { %1821 = vrot.lane.b32.xlu0 %v3466_v15, %s3676_s29 }
 0x2f1   : > { %1823 = vrot.lane.b32.xlu1 %v1758_v47, %s3676_s29  ;;  %p2449_p10 = pnand %p2448_p5, %p3693_p9  ;;  %p2456_p4 = por %p2455_p3, %p2454_p2 }
 0x2f3   : > { %p2450_p12 = pneg %p2449_p10 }
 0x2f4   : > { %1831 = vrot.lane.b32.xlu0 %v3466_v15, %s3677_s25 }
 0x2f5   : > { %1833 = vrot.lane.b32.xlu1 %v1758_v47, %s3677_s25  ;;  %p2457_p7 = pnand %p2456_p4, %p2450_p12 }
 0x2f8   : > { %1873 = vperm.xlu0 %2408, %v1870_v13  }
 0x34a   : > { %v1760_v41 = vpop.permute.xlu0 %1759 }
 0x34b   : > { %v1762_v40 = vpop.permute.xlu1 %1761 }
 0x34c   : > { %v1763_v28 = vsel %vm500_vm3, %v1760_v41, %v1762_v40  ;;  %v1764_v0 = vsel %vm500_vm3, %v1762_v40, %v1760_v41 }
 0x34d   : > { %v1765_v20 = vmul.f32 %v1764_v0, %v2859_v35  ;;  %v1766_v18 = vmul.f32 %v1763_v28, %v2856_v34 }
 0x34e   : > { %v1770_v30 = vpop.permute.xlu0 %1769 }
 0x34f   : > { %v1772_v33 = vpop.permute.xlu1 %1771 }
 0x350   : > { %v1773_v8 = vsel %vm537_vm1, %v1770_v30, %v1772_v33  ;;  %v1774_v23 = vsel %vm537_vm1, %v1772_v33, %v1770_v30  ;;  %vm3684_vm1 = vcmp.lt.s32.totalorder %v2824_v27, 113 }
 0x351   : > { %v1775_v1 = vmul.f32 %v1774_v23, %v2876_v39  ;;  %v1776_v42 = vmul.f32 %v1773_v8, %v2873_v38  ;;  %v3678_v39 = vld [vmem:[#allocation16_spill] sm:$0xff]  ;;  %vm3685_vm3 = vmmov %vm3684_vm1  ;;  %v1841_v23 = vld [vmem:[%s3603_s9] sm:$0xf] }
 0x352   : > { %v1780_v17 = vpop.permute.xlu0 %1779 }
 0x353   : > { %v1860_v11 = vpack.c.bf16 %v1775_v1, %v1765_v20  ;;  %v1782_v21 = vpop.permute.xlu1 %1781  ;;  %v1861_v52 = vpack.c.bf16 %v1776_v42, %v1766_v18 }
 0x354   : > { %v1783_v10 = vsel %vm571_vm8, %v1780_v17, %v1782_v21  ;;  %v1784_v24 = vsel %vm571_vm8, %v1782_v21, %v1780_v17  ;;  %vm3686_vm8 = vcmp.lt.s32.totalorder %v2824_v27, 112 }
 0x355   : > { %1887 = vmatprep.subr.bf16.mxu0 %v1861_v52  ;;  %v1785_v44 = vmul.f32 %v1784_v24, %v3678_v39  ;;  %v1786_v50 = vmul.f32 %v1783_v10, %v3679_v46 }
 0x356   : > { %1888 = vmatpush1.bf16.msra.mxu0 %v1860_v11  ;;  %v1790_v57 = vpop.permute.xlu0 %1789 }
 0x357   : > { %v1792_v35 = vpop.permute.xlu1 %1791 }
 0x358   : > { %v1793_v34 = vsel %vm607_vm6, %v1790_v57, %v1792_v35  ;;  %v1794_v38 = vsel %vm607_vm6, %v1792_v35, %v1790_v57  ;;  %vm3687_vm6 = vmmov %vm3686_vm8 }
 0x359   : > { %v1795_v31 = vmul.f32 %v1794_v38, %v3680_v51  ;;  %v1796_v60 = vmul.f32 %v1793_v34, %v3681_v5 }
 0x35a   : > { %v1802_v32 = vpop.permute.xlu0 %1801 }
 0x35b   : > { %v1862_v9 = vpack.c.bf16 %v1795_v31, %v1785_v44  ;;  %v1804_v36 = vpop.permute.xlu1 %1803  ;;  %v1863_v16 = vpack.c.bf16 %v1796_v60, %v1786_v50 }
 0x35c   : > { %v1805_v54 = vsel %vm645_vm9, %v1802_v32, %v1804_v36  ;;  %v1806_v55 = vsel %vm645_vm9, %v1804_v36, %v1802_v32  ;;  %vm3691_vm9 = vcmp.lt.s32.totalorder %v2824_v27, 111 }
 0x35d   : > { %v1807_v43 = vmul.f32 %v1805_v54, %v3682_v29  ;;  %v1808_v4 = vmul.f32 %v1806_v55, %v3683_v48  ;;  %1889 = vmatprep.subr.bf16.mxu0 %v1863_v16  ;;  %vm3692_vm14 = vmmov %vm3691_vm9 }
 0x35e   : > { %1890 = vmatpush1.bf16.msra.mxu0 %v1862_v9  ;;  %v1812_v26 = vpop.permute.xlu0 %1811 }
 0x35f   : > { %v1864_v12 = vpack.c.bf16 %v1807_v43, %v3466_v15  ;;  %v1814_v59 = vpop.permute.xlu1 %1813  ;;  %v1865_v19 = vpack.c.bf16 %v1808_v4, %v1758_v47 }
 0x360   : > { %v1815_v25 = vsel %vm3684_vm1, %v1812_v26, %v1814_v59  ;;  %v1816_v53 = vsel %vm3685_vm3, %v1814_v59, %v1812_v26 }
 0x361   : > { %1891 = vmatprep.subr.bf16.mxu0 %v1865_v19  ;;  %v1817_v45 = vmul.f32 %v1815_v25, %v3688_v37  ;;  %v1818_v3 = vmul.f32 %v1816_v53, %v3689_v6 }
 0x362   : > { %1892 = vmatpush1.bf16.msra.mxu0 %v1864_v12  ;;  %v1822_v56 = vpop.permute.xlu0 %1821 }
 0x363   : > { %v1824_v22 = vpop.permute.xlu1 %1823 }
 0x364   : > { %v1825_v2 = vsel %vm3686_vm8, %v1822_v56, %v1824_v22  ;;  %v1826_v61 = vsel %vm3687_vm6, %v1824_v22, %v1822_v56 }
 0x365   : > { %v1827_v7 = vmul.f32 %v1825_v2, %v2938_v58  ;;  %v1828_v15 = vmul.f32 %v1826_v61, %v3690_v14 }
 0x366   : > { %v1832_v49 = vpop.permute.xlu0 %1831 }
 0x367   : > { %v1866_v47 = vpack.c.bf16 %v1827_v7, %v1817_v45  ;;  %v1834_v13 = vpop.permute.xlu1 %1833  ;;  %v1867_v41 = vpack.c.bf16 %v1828_v15, %v1818_v3 }
 0x368   : > { %v1835_v40 = vsel %vm3691_vm9, %v1832_v49, %v1834_v13  ;;  %v1836_v28 = vsel %vm3692_vm14, %v1834_v13, %v1832_v49 }
 0x369   : > { %v1837_v0 = vmul.f32 %v1835_v40, %v2955_v63  ;;  %v1838_v30 = vmul.f32 %v1836_v28, %v2952_v62  ;;  %1893 = vmatprep.subr.bf16.mxu0 %v1867_v41 }
 0x36a   : > { %1894 = vmatpush1.bf16.msra.mxu0 %v1866_v47 }
 0x36b   : > { %v1868_v58 = vpack.c.bf16 %v1837_v0, %v1837_v0  ;;  %v1869_v33 = vpack.c.bf16 %v1838_v30, %v1838_v30 }
 0x36d   : > { %2081 = vmatprep.subr.msk.bf16.mxu0 %vm1880_vm11, %v1869_v33  ;;  %v1882_v8 = vsel %vm1880_vm11, %v1868_v58, 0 }
 0x36e   : > { %1896 = vmatpush1.bf16.msra.mxu0 %v1882_v8 }
 0x371   : > { %2082 = vmatmul.mubr.msk.bf16.vlgmr.msra.gmra.mrb[12].mxu0 %vm1876_vm10, %v1841_v23 }
 0x377   : > { %v1874_v27 = vpop.permute.xlu0 %1873 }
 0x444   : > { %v1921_v63 = vpop.f32.mrb[12].mxu0 }
 0x445   : > { %v1922_v62 = vadd.f32 %v1921_v63, %v1874_v27  ;;  %v1923_v20 = vpop.f32.mrb[13].mxu0 }
 0x446   : > { %v1924_v18 = vadd.f32 %v1923_v20, %v1874_v27  ;;  %v1925_v1 = vpop.f32.mrb[14].mxu0 }
 0x447   : > { %v1928_v42 = vmax.f32 %v1922_v62, 0.0  ;;  %v1926_v17 = vpop.f32.mrb[15].mxu0 }
 0x448   : > { %v1929_v11 = vmax.f32 %v1924_v18, 0.0 }
 0x449   : > { %1930 = vst [vmem:[%s405_s22] sm:$0xff] %v1928_v42 }
 0x44a   : > { %1931 = vst [vmem:[%s405_s22 + $0x8] sm:$0xff] %v1929_v11 }
 0x44b   : > { %2460 = shalt.err (!%p2457_p7)
}
 0x44c   : > { %s2461_s16 = scalar_lea.hbm %s3552_s13, 256  ;;  %s2465_s29 = scalar_lea.hbm %s3605_s11, 512 }
 0x44d   : > { %p2462_p8 = scmp.ne.s32.totalorder %s3552_s13, %s2461_s16  ;;  %p2466_p1 = scmp.lt.u32.totalorder %s3552_s13, %s3605_s11 }
 0x44e   : > { %p2467_p0 = scmp.lt.u32.totalorder %s2465_s29, %s2461_s16  ;;  %p2469_p5 = scmp.lt.u32.totalorder %s2461_s16, %s3552_s13 }
 0x44f   : > { %p2463_p11 = pnand %p2462_p8, %p3693_p9 }
 0x450   : > { %p2468_p6 = por %p2467_p0, %p2466_p1 }
 0x451   : > { %p2464_p13 = pneg %p2463_p11 }
 0x452   : > { %p2470_p10 = por %p2469_p5, %p2468_p6 }
 0x454   : > { %p2471_p12 = pnand %p2470_p10, %p2464_p13 }
 0x456   : > { %2474 = shalt.err (!%p2471_p12)
}
 0x457   : > { %2096 = dma.vmem_to_hbm [thread:$0]  (%p3693_p9), %s3554_s24, 256, %s3552_s13, %s1933_s21  }
 0x458 PF: > { %p2108_p2 = scmp.ge.s32.totalorder %s2513_s20, 2  ;;  %s1959_s14 = sand.u32 1, %s2501_s17  }
 0x459   : > { %p3694_p3 = scmp.ne.s32.totalorder %s3641_s28, 0  ;;  %s1960_s30 = scalar_lea.sflag [#allocation6], %s1959_s14 }
 0x45b   : > { %p2103_p4 = pnand %p2108_p2, %p3694_p3 }
 0x45d   : > { %2496 = dma.done.wait (!%p2103_p4), %s1960_s30, 256  }
 0x45e   : > { %2498 = vsyncadd (!%p2103_p4), %s1960_s30, 4294967040  ;;  %s3695_s12 = sld [smem:[#allocation10_spill]]  ;;  %p22_p7 = scmp.ge.s32.totalorder %s2628_s23, 4  }
 0x45f   : > { %s3696_s17 = smov %s2505_s18  ;;  %s3697_s18 = smov %s2509_s19 }
 0x460   : > { %s3699_s20 = smov %s2628_s23  ;;  %24 = sbr.rel (!%p22_p7) target bundleno = 4 (0x4), region = 111 }
 0x464   : > { %s3698_s19 = smov %s3695_s12 }
 0x467   :  { %1965 = vsyncpa [#allocation5], 1 }
 0x468   :  { %1967 = vsyncpa [#allocation5 + $0x1], 1 }
 0x469   :  { %1968 = vsyncpa [#allocation6], 1 }
 0x46a   :  { %1970 = vsyncpa [#allocation6 + $0x1], 1 }

</bundles_post_ra>
